<compile_context>
chip_gen: v6e
topology: v6e:2x2x1
jax: 0.10.0
libtpu: 0.0.40
codegen_flags: <defaults>
</compile_context>

<pallas_src>
import jax
import jax.numpy as jnp
from jax.experimental import pallas as pl
from jax.experimental.pallas import tpu as pltpu

HIDDEN_SIZE = 128
STATIC_FEATURES = 2


def _rnn_fused_kernel(x_ref, wih_ref, whh_ref, bias_ref, out_ref, hn_ref):
    """Whole-sequence vanilla RNN in a single kernel invocation.

    x_ref    : (B*T, F)   batch-major flattened inputs
    wih_ref  : (F, H)     W_ih^T
    whh_ref  : (H, H)     W_hh^T
    bias_ref : (1, H)     b_ih + b_hh
    out_ref  : (B, T, H)  all hidden states (the module's `output`)
    hn_ref   : (1, B, H)  final hidden state (the module's `h_n`)
    """
    B, T, H = out_ref.shape

    # ---- Prologue: input projection for ALL timesteps in one MXU matmul ----
    # Removes the degenerate K=F matmul and the bias broadcast from the serial
    # recurrent dependency chain (one broadcast total instead of T).
    xproj = jnp.dot(x_ref[...], wih_ref[...],
                    preferred_element_type=jnp.float32) + bias_ref[...]
    # (B*T, H) -> (B, T, H): H stays on the lane dim and the sublane dim is
    # split at a tile boundary, so this full store is dense and copy-free.
    out_ref[...] = xproj.reshape(B, T, H)

    # ---- Recurrence: h_t = tanh(xproj_t + h_{t-1} @ W_hh^T),  h_0 = 0 ------
    # T is static, so this loop is fully unrolled at trace time (equivalent to
    # lax.fori_loop(0, T, ..., unroll=True)) with static per-step addressing.
    whh = whh_ref[...]                     # (H, H) loaded once, stays resident
    h = jnp.zeros((B, H), dtype=jnp.float32)
    for t in range(T):
        pre = out_ref[:, t, :] + jnp.dot(h, whh,
                                         preferred_element_type=jnp.float32)
        h = jnp.tanh(pre)
        out_ref[:, t, :] = h               # overwrite xproj_t with h_t

    hn_ref[...] = h[None]                  # final hidden state, (1, B, H)


def rnn_encoder_forward(x, w_ih, w_hh, b_ih, b_hh):
    """Equivalent of Encoder.forward (PyTorch nn.RNN, batch_first=True).

    x    : [B, T, F]
    w_ih : [H, F],  w_hh : [H, H],  b_ih / b_hh : [H]
    returns (output [B, T, H], h_n [1, B, H])
    """
    B, T, F = x.shape
    H = w_ih.shape[0]

    x_flat = x.reshape(B * T, F).astype(jnp.float32)        # free metadata reshape
    wih_t = jnp.transpose(w_ih).astype(jnp.float32)         # (F, H)
    whh_t = jnp.transpose(w_hh).astype(jnp.float32)         # (H, H)
    bias = (b_ih + b_hh).astype(jnp.float32).reshape(1, H)  # (1, H)

    vmem = pltpu.MemorySpace.VMEM
    output, h_n = pl.pallas_call(
        _rnn_fused_kernel,
        out_shape=(
            jax.ShapeDtypeStruct((B, T, H), jnp.float32),
            jax.ShapeDtypeStruct((1, B, H), jnp.float32),
        ),
        # Single invocation (grid = ()): every operand is a full-array block
        # resident in VMEM (total footprint ~100 KiB at these shapes, far
        # under the VMEM limits of v5e / v6e / v7x).
        in_specs=[
            pl.BlockSpec(memory_space=vmem),   # x_flat
            pl.BlockSpec(memory_space=vmem),   # W_ih^T
            pl.BlockSpec(memory_space=vmem),   # W_hh^T
            pl.BlockSpec(memory_space=vmem),   # bias
        ],
        out_specs=(
            pl.BlockSpec(memory_space=vmem),   # output
            pl.BlockSpec(memory_space=vmem),   # h_n
        ),
    )(x_flat, wih_t, whh_t, bias)
    return output, h_n


def _reference_rnn(x, w_ih, w_hh, b_ih, b_hh):
    """Pure-JAX reference of the same recurrence (sanity check)."""
    B, T, F = x.shape
    H = w_ih.shape[0]
    h = jnp.zeros((B, H), jnp.float32)
    outs = []
    for t in range(T):
        h = jnp.tanh(x[:, t, :] @ w_ih.T + b_ih + h @ w_hh.T + b_hh)
        outs.append(h)
    out = jnp.stack(outs, axis=1)
    return out, out[:, -1][None]


if __name__ == "__main__":
    key = jax.random.PRNGKey(0)
    B, T, F, H = 8, 8, STATIC_FEATURES, HIDDEN_SIZE

    k_x, k_wih, k_whh, k_bih, k_bhh = jax.random.split(key, 5)
    bound = 1.0 / jnp.sqrt(H)  # mimic PyTorch nn.RNN uniform init bound

    x = jax.random.normal(k_x, (B, T, F), dtype=jnp.float32)
    w_ih = jax.random.uniform(k_wih, (H, F), minval=-bound, maxval=bound, dtype=jnp.float32)
    w_hh = jax.random.uniform(k_whh, (H, H), minval=-bound, maxval=bound, dtype=jnp.float32)
    b_ih = jax.random.uniform(k_bih, (H,), minval=-bound, maxval=bound, dtype=jnp.float32)
    b_hh = jax.random.uniform(k_bhh, (H,), minval=-bound, maxval=bound, dtype=jnp.float32)

    fwd = jax.jit(rnn_encoder_forward)
    output, h_n = fwd(x, w_ih, w_hh, b_ih, b_hh)
    jax.block_until_ready(output)
    jax.block_until_ready(h_n)

    # correctness check against a pure-JAX reference
    ref_out, ref_hn = _reference_rnn(x, w_ih, w_hh, b_ih, b_hh)
    assert output.shape == (B, T, H) and h_n.shape == (1, B, H)
    assert jnp.allclose(output, ref_out, atol=1e-5, rtol=1e-5)
    assert jnp.allclose(h_n, ref_hn, atol=1e-5, rtol=1e-5)

    print("KERNEL_OK")
</pallas_src>

<mosaic_0001>
module attributes {stable_mosaic.version = 11 : i64} {
  func.func @_rnn_fused_kernel(%arg0: memref<64x2xf32, #tpu.memory_space<vmem>>, %arg1: memref<2x128xf32, #tpu.memory_space<vmem>>, %arg2: memref<128x128xf32, #tpu.memory_space<vmem>>, %arg3: memref<1x128xf32, #tpu.memory_space<vmem>>, %arg4: memref<8x8x128xf32, #tpu.memory_space<vmem>>, %arg5: memref<1x8x128xf32, #tpu.memory_space<vmem>>) attributes {dimension_semantics = [], scalar_prefetch = 0 : i64, scratch_operands = 0 : i64, tpu.core_type = #tpu.core_type<tc>} {
    %c0 = arith.constant 0 : index
    %c0_0 = arith.constant 0 : index
    %0 = vector.load %arg0[%c0, %c0_0] : memref<64x2xf32, #tpu.memory_space<vmem>>, vector<64x2xf32>
    %c0_1 = arith.constant 0 : index
    %c0_2 = arith.constant 0 : index
    %1 = vector.load %arg1[%c0_1, %c0_2] : memref<2x128xf32, #tpu.memory_space<vmem>>, vector<2x128xf32>
    %cst = arith.constant dense<0.000000e+00> : vector<64x128xf32>
    %2 = tpu.matmul %0, %1, %cst {dimension_numbers = #tpu.dot_dimension_numbers<[1], [0], [0], [1], [0, 0, 1, 1], [], []>} : vector<64x2xf32>, vector<2x128xf32>, vector<64x128xf32> -> vector<64x128xf32>
    %c0_3 = arith.constant 0 : index
    %c0_4 = arith.constant 0 : index
    %3 = vector.load %arg3[%c0_3, %c0_4] : memref<1x128xf32, #tpu.memory_space<vmem>>, vector<1x128xf32>
    %4 = vector.broadcast %3 : vector<1x128xf32> to vector<64x128xf32>
    %5 = arith.addf %2, %4 : vector<64x128xf32>
    %6 = vector.shape_cast %5 : vector<64x128xf32> to vector<8x8x128xf32>
    %c0_5 = arith.constant 0 : index
    %c0_6 = arith.constant 0 : index
    %c0_7 = arith.constant 0 : index
    %7 = vector.load %arg4[%c0_5, %c0_6, %c0_7] : memref<8x8x128xf32, #tpu.memory_space<vmem>>, vector<8x8x128xf32>
    tpu.vector_store %arg4[%c0_5, %c0_6, %c0_7], %6 {strides = array<i32>} : memref<8x8x128xf32, #tpu.memory_space<vmem>>, vector<8x8x128xf32>,
    %c0_8 = arith.constant 0 : index
    %c0_9 = arith.constant 0 : index
    %8 = vector.load %arg2[%c0_8, %c0_9] : memref<128x128xf32, #tpu.memory_space<vmem>>, vector<128x128xf32>
    %cst_10 = arith.constant 0.000000e+00 : f32
    %9 = vector.broadcast %cst_10 : f32 to vector<8x128xf32>
    %c0_11 = arith.constant 0 : index
    %c0_12 = arith.constant 0 : index
    %c0_13 = arith.constant 0 : index
    %10 = vector.load %arg4[%c0_11, %c0_12, %c0_13] : memref<8x8x128xf32, #tpu.memory_space<vmem>>, vector<8x1x128xf32>
    %11 = vector.shape_cast %10 : vector<8x1x128xf32> to vector<8x128xf32>
    %cst_14 = arith.constant dense<0.000000e+00> : vector<8x128xf32>
    %12 = tpu.matmul %9, %8, %cst_14 {dimension_numbers = #tpu.dot_dimension_numbers<[1], [0], [0], [1], [0, 0, 1, 1], [], []>} : vector<8x128xf32>, vector<128x128xf32>, vector<8x128xf32> -> vector<8x128xf32>
    %13 = arith.addf %11, %12 : vector<8x128xf32>
    %14 = math.tanh %13 : vector<8x128xf32>
    %c0_15 = arith.constant 0 : index
    %c0_16 = arith.constant 0 : index
    %c0_17 = arith.constant 0 : index
    %15 = vector.load %arg4[%c0_15, %c0_16, %c0_17] : memref<8x8x128xf32, #tpu.memory_space<vmem>>, vector<8x1x128xf32>
    %16 = vector.shape_cast %15 : vector<8x1x128xf32> to vector<8x128xf32>
    %17 = vector.shape_cast %14 : vector<8x128xf32> to vector<8x1x128xf32>
    tpu.vector_store %arg4[%c0_15, %c0_16, %c0_17], %17 {strides = array<i32>} : memref<8x8x128xf32, #tpu.memory_space<vmem>>, vector<8x1x128xf32>,
    %c0_18 = arith.constant 0 : index
    %c1 = arith.constant 1 : index
    %c0_19 = arith.constant 0 : index
    %18 = vector.load %arg4[%c0_18, %c1, %c0_19] : memref<8x8x128xf32, #tpu.memory_space<vmem>>, vector<8x1x128xf32>
    %19 = vector.shape_cast %18 : vector<8x1x128xf32> to vector<8x128xf32>
    %cst_20 = arith.constant dense<0.000000e+00> : vector<8x128xf32>
    %20 = tpu.matmul %14, %8, %cst_20 {dimension_numbers = #tpu.dot_dimension_numbers<[1], [0], [0], [1], [0, 0, 1, 1], [], []>} : vector<8x128xf32>, vector<128x128xf32>, vector<8x128xf32> -> vector<8x128xf32>
    %21 = arith.addf %19, %20 : vector<8x128xf32>
    %22 = math.tanh %21 : vector<8x128xf32>
    %c0_21 = arith.constant 0 : index
    %c1_22 = arith.constant 1 : index
    %c0_23 = arith.constant 0 : index
    %23 = vector.load %arg4[%c0_21, %c1_22, %c0_23] : memref<8x8x128xf32, #tpu.memory_space<vmem>>, vector<8x1x128xf32>
    %24 = vector.shape_cast %23 : vector<8x1x128xf32> to vector<8x128xf32>
    %25 = vector.shape_cast %22 : vector<8x128xf32> to vector<8x1x128xf32>
    tpu.vector_store %arg4[%c0_21, %c1_22, %c0_23], %25 {strides = array<i32>} : memref<8x8x128xf32, #tpu.memory_space<vmem>>, vector<8x1x128xf32>,
    %c0_24 = arith.constant 0 : index
    %c2 = arith.constant 2 : index
    %c0_25 = arith.constant 0 : index
    %26 = vector.load %arg4[%c0_24, %c2, %c0_25] : memref<8x8x128xf32, #tpu.memory_space<vmem>>, vector<8x1x128xf32>
    %27 = vector.shape_cast %26 : vector<8x1x128xf32> to vector<8x128xf32>
    %cst_26 = arith.constant dense<0.000000e+00> : vector<8x128xf32>
    %28 = tpu.matmul %22, %8, %cst_26 {dimension_numbers = #tpu.dot_dimension_numbers<[1], [0], [0], [1], [0, 0, 1, 1], [], []>} : vector<8x128xf32>, vector<128x128xf32>, vector<8x128xf32> -> vector<8x128xf32>
    %29 = arith.addf %27, %28 : vector<8x128xf32>
    %30 = math.tanh %29 : vector<8x128xf32>
    %c0_27 = arith.constant 0 : index
    %c2_28 = arith.constant 2 : index
    %c0_29 = arith.constant 0 : index
    %31 = vector.load %arg4[%c0_27, %c2_28, %c0_29] : memref<8x8x128xf32, #tpu.memory_space<vmem>>, vector<8x1x128xf32>
    %32 = vector.shape_cast %31 : vector<8x1x128xf32> to vector<8x128xf32>
    %33 = vector.shape_cast %30 : vector<8x128xf32> to vector<8x1x128xf32>
    tpu.vector_store %arg4[%c0_27, %c2_28, %c0_29], %33 {strides = array<i32>} : memref<8x8x128xf32, #tpu.memory_space<vmem>>, vector<8x1x128xf32>,
    %c0_30 = arith.constant 0 : index
    %c3 = arith.constant 3 : index
    %c0_31 = arith.constant 0 : index
    %34 = vector.load %arg4[%c0_30, %c3, %c0_31] : memref<8x8x128xf32, #tpu.memory_space<vmem>>, vector<8x1x128xf32>
    %35 = vector.shape_cast %34 : vector<8x1x128xf32> to vector<8x128xf32>
    %cst_32 = arith.constant dense<0.000000e+00> : vector<8x128xf32>
    %36 = tpu.matmul %30, %8, %cst_32 {dimension_numbers = #tpu.dot_dimension_numbers<[1], [0], [0], [1], [0, 0, 1, 1], [], []>} : vector<8x128xf32>, vector<128x128xf32>, vector<8x128xf32> -> vector<8x128xf32>
    %37 = arith.addf %35, %36 : vector<8x128xf32>
    %38 = math.tanh %37 : vector<8x128xf32>
    %c0_33 = arith.constant 0 : index
    %c3_34 = arith.constant 3 : index
    %c0_35 = arith.constant 0 : index
    %39 = vector.load %arg4[%c0_33, %c3_34, %c0_35] : memref<8x8x128xf32, #tpu.memory_space<vmem>>, vector<8x1x128xf32>
    %40 = vector.shape_cast %39 : vector<8x1x128xf32> to vector<8x128xf32>
    %41 = vector.shape_cast %38 : vector<8x128xf32> to vector<8x1x128xf32>
    tpu.vector_store %arg4[%c0_33, %c3_34, %c0_35], %41 {strides = array<i32>} : memref<8x8x128xf32, #tpu.memory_space<vmem>>, vector<8x1x128xf32>,
    %c0_36 = arith.constant 0 : index
    %c4 = arith.constant 4 : index
    %c0_37 = arith.constant 0 : index
    %42 = vector.load %arg4[%c0_36, %c4, %c0_37] : memref<8x8x128xf32, #tpu.memory_space<vmem>>, vector<8x1x128xf32>
    %43 = vector.shape_cast %42 : vector<8x1x128xf32> to vector<8x128xf32>
    %cst_38 = arith.constant dense<0.000000e+00> : vector<8x128xf32>
    %44 = tpu.matmul %38, %8, %cst_38 {dimension_numbers = #tpu.dot_dimension_numbers<[1], [0], [0], [1], [0, 0, 1, 1], [], []>} : vector<8x128xf32>, vector<128x128xf32>, vector<8x128xf32> -> vector<8x128xf32>
    %45 = arith.addf %43, %44 : vector<8x128xf32>
    %46 = math.tanh %45 : vector<8x128xf32>
    %c0_39 = arith.constant 0 : index
    %c4_40 = arith.constant 4 : index
    %c0_41 = arith.constant 0 : index
    %47 = vector.load %arg4[%c0_39, %c4_40, %c0_41] : memref<8x8x128xf32, #tpu.memory_space<vmem>>, vector<8x1x128xf32>
    %48 = vector.shape_cast %47 : vector<8x1x128xf32> to vector<8x128xf32>
    %49 = vector.shape_cast %46 : vector<8x128xf32> to vector<8x1x128xf32>
    tpu.vector_store %arg4[%c0_39, %c4_40, %c0_41], %49 {strides = array<i32>} : memref<8x8x128xf32, #tpu.memory_space<vmem>>, vector<8x1x128xf32>,
    %c0_42 = arith.constant 0 : index
    %c5 = arith.constant 5 : index
    %c0_43 = arith.constant 0 : index
    %50 = vector.load %arg4[%c0_42, %c5, %c0_43] : memref<8x8x128xf32, #tpu.memory_space<vmem>>, vector<8x1x128xf32>
    %51 = vector.shape_cast %50 : vector<8x1x128xf32> to vector<8x128xf32>
    %cst_44 = arith.constant dense<0.000000e+00> : vector<8x128xf32>
    %52 = tpu.matmul %46, %8, %cst_44 {dimension_numbers = #tpu.dot_dimension_numbers<[1], [0], [0], [1], [0, 0, 1, 1], [], []>} : vector<8x128xf32>, vector<128x128xf32>, vector<8x128xf32> -> vector<8x128xf32>
    %53 = arith.addf %51, %52 : vector<8x128xf32>
    %54 = math.tanh %53 : vector<8x128xf32>
    %c0_45 = arith.constant 0 : index
    %c5_46 = arith.constant 5 : index
    %c0_47 = arith.constant 0 : index
    %55 = vector.load %arg4[%c0_45, %c5_46, %c0_47] : memref<8x8x128xf32, #tpu.memory_space<vmem>>, vector<8x1x128xf32>
    %56 = vector.shape_cast %55 : vector<8x1x128xf32> to vector<8x128xf32>
    %57 = vector.shape_cast %54 : vector<8x128xf32> to vector<8x1x128xf32>
    tpu.vector_store %arg4[%c0_45, %c5_46, %c0_47], %57 {strides = array<i32>} : memref<8x8x128xf32, #tpu.memory_space<vmem>>, vector<8x1x128xf32>,
    %c0_48 = arith.constant 0 : index
    %c6 = arith.constant 6 : index
    %c0_49 = arith.constant 0 : index
    %58 = vector.load %arg4[%c0_48, %c6, %c0_49] : memref<8x8x128xf32, #tpu.memory_space<vmem>>, vector<8x1x128xf32>
    %59 = vector.shape_cast %58 : vector<8x1x128xf32> to vector<8x128xf32>
    %cst_50 = arith.constant dense<0.000000e+00> : vector<8x128xf32>
    %60 = tpu.matmul %54, %8, %cst_50 {dimension_numbers = #tpu.dot_dimension_numbers<[1], [0], [0], [1], [0, 0, 1, 1], [], []>} : vector<8x128xf32>, vector<128x128xf32>, vector<8x128xf32> -> vector<8x128xf32>
    %61 = arith.addf %59, %60 : vector<8x128xf32>
    %62 = math.tanh %61 : vector<8x128xf32>
    %c0_51 = arith.constant 0 : index
    %c6_52 = arith.constant 6 : index
    %c0_53 = arith.constant 0 : index
    %63 = vector.load %arg4[%c0_51, %c6_52, %c0_53] : memref<8x8x128xf32, #tpu.memory_space<vmem>>, vector<8x1x128xf32>
    %64 = vector.shape_cast %63 : vector<8x1x128xf32> to vector<8x128xf32>
    %65 = vector.shape_cast %62 : vector<8x128xf32> to vector<8x1x128xf32>
    tpu.vector_store %arg4[%c0_51, %c6_52, %c0_53], %65 {strides = array<i32>} : memref<8x8x128xf32, #tpu.memory_space<vmem>>, vector<8x1x128xf32>,
    %c0_54 = arith.constant 0 : index
    %c7 = arith.constant 7 : index
    %c0_55 = arith.constant 0 : index
    %66 = vector.load %arg4[%c0_54, %c7, %c0_55] : memref<8x8x128xf32, #tpu.memory_space<vmem>>, vector<8x1x128xf32>
    %67 = vector.shape_cast %66 : vector<8x1x128xf32> to vector<8x128xf32>
    %cst_56 = arith.constant dense<0.000000e+00> : vector<8x128xf32>
    %68 = tpu.matmul %62, %8, %cst_56 {dimension_numbers = #tpu.dot_dimension_numbers<[1], [0], [0], [1], [0, 0, 1, 1], [], []>} : vector<8x128xf32>, vector<128x128xf32>, vector<8x128xf32> -> vector<8x128xf32>
    %69 = arith.addf %67, %68 : vector<8x128xf32>
    %70 = math.tanh %69 : vector<8x128xf32>
    %c0_57 = arith.constant 0 : index
    %c7_58 = arith.constant 7 : index
    %c0_59 = arith.constant 0 : index
    %71 = vector.load %arg4[%c0_57, %c7_58, %c0_59] : memref<8x8x128xf32, #tpu.memory_space<vmem>>, vector<8x1x128xf32>
    %72 = vector.shape_cast %71 : vector<8x1x128xf32> to vector<8x128xf32>
    %73 = vector.shape_cast %70 : vector<8x128xf32> to vector<8x1x128xf32>
    tpu.vector_store %arg4[%c0_57, %c7_58, %c0_59], %73 {strides = array<i32>} : memref<8x8x128xf32, #tpu.memory_space<vmem>>, vector<8x1x128xf32>,
    %74 = vector.shape_cast %70 : vector<8x128xf32> to vector<1x8x128xf32>
    %c0_60 = arith.constant 0 : index
    %c0_61 = arith.constant 0 : index
    %c0_62 = arith.constant 0 : index
    %75 = vector.load %arg5[%c0_60, %c0_61, %c0_62] : memref<1x8x128xf32, #tpu.memory_space<vmem>>, vector<1x8x128xf32>
    tpu.vector_store %arg5[%c0_60, %c0_61, %c0_62], %74 {strides = array<i32>} : memref<1x8x128xf32, #tpu.memory_space<vmem>>, vector<1x8x128xf32>,
    return
  }
}

</mosaic_0001>

<bundles_post_ra>
// kernel: rnn_encoder_forward.1
= control target key start
LH: loop header
LB: loop body
LE: loop exit
PB: predicated region body
PF: predicated region fallthrough
CT: control target
= control target key end

     0   :  { %11 = vsyncpa [#allocation3], 0  ;;  %vm62_vm0 = vcmask 1041408   ;;  %v2004_v1 = vmov 0.0   ;;  %vm37_vm1 = vcmask 15360   ;;  %vm2005_vm2 = vmmov 0   ;;  %s2540_s0 = inlined_call_operand.vmem [shape: f32[64,2], index: 0, kind: input, shape index: {}]   ;;  %s2541_s1 = inlined_call_operand.vmem [shape: f32[2,128], index: 1, kind: input, shape index: {}]   ;;  %s2542_s2 = inlined_call_operand.vmem [shape: f32[128,128], index: 2, kind: input, shape index: {}]   ;;  %s2543_s3 = inlined_call_operand.vmem [shape: f32[1,128], index: 3, kind: input, shape index: {}]   ;;  %s2544_s4 = inlined_call_operand.hbm [shape: f32[8,8,128], index: 4, kind: output, shape index: {0}]   ;;  %s2545_s5 = inlined_call_operand.hbm [shape: f32[1,8,128], index: 5, kind: output, shape index: {1}]  }
   0x1   :  { %v2043_v0 = vld [vmem:[%s2542_s2 + $0x78] sm:$0xff]  ;;  %1530 = vmatprep.subr.mxu1 %v2004_v1  ;;  %v2049_v2 = vld [vmem:[%s2542_s2 + $0x70] sm:$0xff]  ;;  %v29_v3 = vld [vmem:[%s2541_s1] sm:$0x3]  ;;  %1562 = vmatprep.mubr.msk.f32.mxu1 %vm2005_vm2, %v2004_v1 }
   0x2   :  { %v21_v4 = vld [vmem:[%s2540_s0] sm:$0xff]  ;;  %1531 = vmatpush3.msra.mxu1 %v2043_v0  ;;  %1516 = vmatprep.subr.msk.mxu0 %vm62_vm0, %v29_v3  ;;  %v22_v5 = vld [vmem:[%s2540_s0 + $0x8] sm:$0xff]  ;;  %v23_v7 = vld [vmem:[%s2540_s0 + $0x10] sm:$0xff] }
   0x3   :  { %1532 = vmatprep.subr.mxu1 %v2004_v1  ;;  %v2065_v6 = vld [vmem:[%s2542_s2 + $0x68] sm:$0xff]  ;;  %1517 = vmatpush3.msk.msra.mxu0 %vm62_vm0, %v29_v3  ;;  %v2076_v8 = vld [vmem:[%s2542_s2 + $0x60] sm:$0xff]  ;;  %v24_v9 = vld [vmem:[%s2540_s0 + $0x18] sm:$0xff] }
   0x4   :  { %1533 = vmatpush3.msra.mxu1 %v2049_v2  ;;  %1518 = vmatprep.mubr.msk.f32.mxu0 %vm37_vm1, %v21_v4  ;;  %v2088_v10 = vld [vmem:[%s2542_s2 + $0x58] sm:$0xff]  ;;  %v25_v11 = vld [vmem:[%s2540_s0 + $0x20] sm:$0xff] }
   0x5   :  { %1534 = vmatprep.subr.mxu1 %v2004_v1  ;;  %1519 = vmatmul.mubr.msk.f32.vlgmr.msra.gmra.mxu0 %vm37_vm1, %v22_v5 }
   0x6   :  { %1535 = vmatpush3.msra.mxu1 %v2065_v6  ;;  %1521 = vmatprep.mubr.msk.f32.mxu0 %vm37_vm1, %v23_v7 }
   0x7   :  { %1536 = vmatprep.subr.mxu1 %v2004_v1  ;;  %1565 = vmatprep.subr.mxu0 %v2004_v1 }
   0x8   :  { %1537 = vmatpush3.msra.mxu1 %v2076_v8 }
   0x9   :  { %12 = vsyncpa [#allocation5], 0  ;;  %1538 = vmatprep.subr.mxu1 %v2004_v1  ;;  %v2101_v12 = vld [vmem:[%s2542_s2 + $0x50] sm:$0xff]  ;;  %1522 = vmatmul.mubr.msk.f32.gmra.mxu0 %vm37_vm1, %v24_v9  ;;  %v26_v13 = vld [vmem:[%s2540_s0 + $0x28] sm:$0xff]  ;;  %vm330_vm3 = vcmask 1041409   ;;  %vm333_vm4 = vcmask 1042434  }
   0xa   :  { %1539 = vmatpush3.msra.mxu1 %v2088_v10  ;;  %1524 = vmatprep.mubr.msk.f32.mxu0 %vm37_vm1, %v25_v11  ;;  %v2113_v14 = vld [vmem:[%s2542_s2 + $0x48] sm:$0xff]  ;;  %v27_v15 = vld [vmem:[%s2540_s0 + $0x30] sm:$0xff]  ;;  %v2125_v16 = vld [vmem:[%s2542_s2 + $0x40] sm:$0xff]  ;;  %vm336_vm5 = vcmask 1043459   ;;  %vm339_vm6 = vcmask 1044484   ;;  %vm342_vm7 = vcmask 1045509  }
   0xb   :  { %1540 = vmatprep.subr.mxu1 %v2004_v1  ;;  %1566 = vmatpush3.msra.mxu0 %v2043_v0  ;;  %v28_v17 = vld [vmem:[%s2540_s0 + $0x38] sm:$0xff]  ;;  %v2146_v19 = vld [vmem:[%s2542_s2 + $0x30] sm:$0xff]  ;;  %v2155_v20 = vld [vmem:[%s2542_s2 + $0x28] sm:$0xff]  ;;  %vm345_vm8 = vcmask 1046534   ;;  %vm348_vm9 = vcmask 1047559   ;;  %s2007_s21 = smov [#allocation4]  }
   0xc   :  { %1541 = vmatpush3.msra.mxu1 %v2101_v12  ;;  %1567 = vmatprep.subr.mxu0 %v2004_v1  ;;  %v2137_v18 = vld [vmem:[%s2542_s2 + $0x38] sm:$0xff]  ;;  %v2164_v21 = vld [vmem:[%s2542_s2 + $0x20] sm:$0xff]  ;;  %v2182_v23 = vld [vmem:[%s2542_s2 + $0x10] sm:$0xff]  ;;  %s1349_s22 = sshll.u32 %s2007_s21, 4  ;;  %s1350_s22 = int_to_ptr.vmem [resolvable:$true] %s1349_s22 }
   0xd   :  { %1542 = vmatprep.subr.mxu1 %v2004_v1  ;;  %1525 = vmatmul.mubr.msk.f32.gmra.mxu0 %vm37_vm1, %v26_v13  ;;  %v2173_v22 = vld [vmem:[%s2542_s2 + $0x18] sm:$0xff]  ;;  %v2191_v24 = vld [vmem:[%s2542_s2 + $0x8] sm:$0xff]  ;;  %v2200_v25 = vld [vmem:[%s2542_s2] sm:$0xff] }
   0xe   :  { %1543 = vmatpush3.msra.mxu1 %v2113_v14  ;;  %1527 = vmatprep.mubr.msk.f32.mxu0 %vm37_vm1, %v27_v15  ;;  %v1361_v26 = vld [vmem:[%s2543_s3] ss:$0 sm:$0xff] }
   0xf   :  { %1544 = vmatprep.subr.mxu1 %v2004_v1  ;;  %1568 = vmatpush3.msra.mxu0 %v2049_v2 }
  0x10   :  { %1545 = vmatpush3.msra.mxu1 %v2125_v16  ;;  %1569 = vmatprep.subr.mxu0 %v2004_v1 }
  0x11   :  { %1546 = vmatprep.subr.mxu1 %v2004_v1  ;;  %1528 = vmatmul.mubr.msk.f32.gmra.mxu0 %vm37_vm1, %v28_v17 }
  0x12   :  { %1547 = vmatpush3.msra.mxu1 %v2137_v18  ;;  %1570 = vmatpush3.msra.mxu0 %v2065_v6 }
  0x13   :  { %1548 = vmatprep.subr.mxu1 %v2004_v1  ;;  %1571 = vmatprep.subr.mxu0 %v2004_v1 }
  0x14   :  { %1549 = vmatpush3.msra.mxu1 %v2146_v19  ;;  %1572 = vmatpush3.msra.mxu0 %v2076_v8 }
  0x15   :  { %1550 = vmatprep.subr.mxu1 %v2004_v1  ;;  %1573 = vmatprep.subr.mxu0 %v2004_v1 }
  0x16   :  { %1551 = vmatpush3.msra.mxu1 %v2155_v20  ;;  %1574 = vmatpush3.msra.mxu0 %v2088_v10 }
  0x17   :  { %1552 = vmatprep.subr.mxu1 %v2004_v1  ;;  %1575 = vmatprep.subr.mxu0 %v2004_v1 }
  0x18   :  { %1553 = vmatpush3.msra.mxu1 %v2164_v21  ;;  %1576 = vmatpush3.msra.mxu0 %v2101_v12 }
  0x19   :  { %1554 = vmatprep.subr.mxu1 %v2004_v1  ;;  %1577 = vmatprep.subr.mxu0 %v2004_v1 }
  0x1a   :  { %1555 = vmatpush3.msra.mxu1 %v2173_v22  ;;  %1578 = vmatpush3.msra.mxu0 %v2113_v14 }
  0x1b   :  { %1556 = vmatprep.subr.mxu1 %v2004_v1  ;;  %1579 = vmatprep.subr.mxu0 %v2004_v1 }
  0x1c   :  { %1557 = vmatpush3.msra.mxu1 %v2182_v23  ;;  %1580 = vmatpush3.msra.mxu0 %v2125_v16 }
  0x1d   :  { %1558 = vmatprep.subr.mxu1 %v2004_v1  ;;  %1581 = vmatprep.subr.mxu0 %v2004_v1 }
  0x1e   :  { %1559 = vmatpush3.msra.mxu1 %v2191_v24  ;;  %1582 = vmatpush3.msra.mxu0 %v2137_v18 }
  0x1f   :  { %1560 = vmatprep.subr.mxu1 %v2004_v1  ;;  %1583 = vmatprep.subr.mxu0 %v2004_v1 }
  0x20   :  { %1561 = vmatpush3.msra.mxu1 %v2200_v25  ;;  %1584 = vmatpush3.msra.mxu0 %v2146_v19 }
  0x21   :  { %1563 = vmatmul.mubr.f32.vlgmr.msra.gmra.mxu1 %v2004_v1  ;;  %1585 = vmatprep.subr.mxu0 %v2004_v1 }
  0x22   :  { %1586 = vmatpush3.msra.mxu0 %v2155_v20  ;;  %1597 = vmatprep.mubr.msk.f32.mxu0 %vm2005_vm2, %v2004_v1 }
  0x23   :  { %1587 = vmatprep.subr.mxu0 %v2004_v1  ;;  %1600 = vmatprep.subr.mxu1 %v2004_v1 }
  0x24   :  { %1588 = vmatpush3.msra.mxu0 %v2164_v21  ;;  %1601 = vmatpush3.msra.mxu1 %v2043_v0 }
  0x25   :  { %1589 = vmatprep.subr.mxu0 %v2004_v1  ;;  %1602 = vmatprep.subr.mxu1 %v2004_v1 }
  0x26   :  { %1590 = vmatpush3.msra.mxu0 %v2173_v22  ;;  %1603 = vmatpush3.msra.mxu1 %v2049_v2 }
  0x27   :  { %1591 = vmatprep.subr.mxu0 %v2004_v1  ;;  %1604 = vmatprep.subr.mxu1 %v2004_v1 }
  0x28   :  { %1592 = vmatpush3.msra.mxu0 %v2182_v23  ;;  %1605 = vmatpush3.msra.mxu1 %v2065_v6 }
  0x29   :  { %1593 = vmatprep.subr.mxu0 %v2004_v1  ;;  %1606 = vmatprep.subr.mxu1 %v2004_v1 }
  0x2a   :  { %1594 = vmatpush3.msra.mxu0 %v2191_v24  ;;  %1607 = vmatpush3.msra.mxu1 %v2076_v8 }
  0x2b   :  { %1595 = vmatprep.subr.mxu0 %v2004_v1  ;;  %1608 = vmatprep.subr.mxu1 %v2004_v1 }
  0x2c   :  { %1596 = vmatpush3.msra.mxu0 %v2200_v25  ;;  %1609 = vmatpush3.msra.mxu1 %v2088_v10 }
  0x2d   :  { %1610 = vmatprep.subr.mxu1 %v2004_v1  ;;  %1632 = vmatprep.mubr.msk.f32.mxu1 %vm2005_vm2, %v2004_v1 }
  0x2e   :  { %1611 = vmatpush3.msra.mxu1 %v2101_v12  ;;  %1635 = vmatprep.subr.mxu0 %v2004_v1 }
  0x2f   :  { %1612 = vmatprep.subr.mxu1 %v2004_v1 }
  0x30   :  { %1613 = vmatpush3.msra.mxu1 %v2113_v14 }
  0x31   :  { %1614 = vmatprep.subr.mxu1 %v2004_v1 }
  0x32   :  { %1615 = vmatpush3.msra.mxu1 %v2125_v16 }
  0x33   :  { %1616 = vmatprep.subr.mxu1 %v2004_v1 }
  0x34   :  { %1617 = vmatpush3.msra.mxu1 %v2137_v18 }
  0x35   :  { %1618 = vmatprep.subr.mxu1 %v2004_v1 }
  0x36   :  { %1619 = vmatpush3.msra.mxu1 %v2146_v19 }
  0x37   :  { %1620 = vmatprep.subr.mxu1 %v2004_v1 }
  0x38   :  { %1621 = vmatpush3.msra.mxu1 %v2155_v20 }
  0x39   :  { %1622 = vmatprep.subr.mxu1 %v2004_v1 }
  0x3a   :  { %1623 = vmatpush3.msra.mxu1 %v2164_v21 }
  0x3b   :  { %1624 = vmatprep.subr.mxu1 %v2004_v1 }
  0x3c   :  { %1625 = vmatpush3.msra.mxu1 %v2173_v22 }
  0x3d   :  { %1626 = vmatprep.subr.mxu1 %v2004_v1 }
  0x3e   :  { %1627 = vmatpush3.msra.mxu1 %v2182_v23 }
  0x3f   :  { %1628 = vmatprep.subr.mxu1 %v2004_v1 }
  0x40   :  { %1629 = vmatpush3.msra.mxu1 %v2191_v24 }
  0x41   :  { %1630 = vmatprep.subr.mxu1 %v2004_v1 }
  0x42   :  { %1631 = vmatpush3.msra.mxu1 %v2200_v25 }
  0x43   :  { %1670 = vmatprep.subr.mxu1 %v2004_v1 }
  0xc5   :  { %v1520_v27 = vpop.f32.mrf.mxu0 }
  0xc6   :  { %v138_v28 = vadd.f32 %v1520_v27, %v1361_v26 }
  0xc7   :  { %v132_v29 = vpop.f32.mrf.mxu0 }
  0xc8   :  { %172 = vst [vmem:[#allocation2 + $0x8] sm:$0xff] %v138_v28  ;;  %v133_v30 = vadd.f32 %v1361_v26, %v132_v29 }
  0xc9   :  { %v1523_v31 = vpop.f32.mrf.mxu0 }
  0xca   :  { %171 = vst [vmem:[#allocation2] sm:$0xff] %v133_v30  ;;  %v148_v32 = vadd.f32 %v1523_v31, %v1361_v26 }
  0xcb   :  { %v142_v33 = vpop.f32.mrf.mxu0 }
  0xcc   :  { %174 = vst [vmem:[#allocation2 + $0x18] sm:$0xff] %v148_v32  ;;  %v143_v34 = vadd.f32 %v1361_v26, %v142_v33 }
  0xcd   :  { %v1526_v35 = vpop.f32.mrf.mxu0 }
  0xce   :  { %173 = vst [vmem:[#allocation2 + $0x10] sm:$0xff] %v143_v34  ;;  %v158_v36 = vadd.f32 %v1526_v35, %v1361_v26 }
  0xcf   :  { %v152_v37 = vpop.f32.mrf.mxu0  ;;  %v196_v44 = vld [vmem:[#allocation2 + $0x8] sm:$0x1] }
  0xd0   :  { %176 = vst [vmem:[#allocation2 + $0x28] sm:$0xff] %v158_v36  ;;  %v153_v38 = vadd.f32 %v1361_v26, %v152_v37 }
  0xd1   :  { %v1529_v39 = vpop.f32.mrf.mxu0  ;;  %v195_v43 = vld [vmem:[#allocation2] sm:$0x1] }
  0xd2   :  { %175 = vst [vmem:[#allocation2 + $0x20] sm:$0xff] %v153_v38  ;;  %v168_v40 = vadd.f32 %v1529_v39, %v1361_v26 }
  0xd3   :  { %v162_v41 = vpop.f32.mrf.mxu0  ;;  %v198_v45 = vld [vmem:[#allocation2 + $0x18] sm:$0x1] }
  0xd4   :  { %178 = vst [vmem:[#allocation2 + $0x38] sm:$0xff] %v168_v40  ;;  %v163_v42 = vadd.f32 %v1361_v26, %v162_v41 }
  0xd5   :  { %v197_v52 = vld [vmem:[#allocation2 + $0x10] sm:$0x1] }
  0xd6   :  { %177 = vst [vmem:[#allocation2 + $0x30] sm:$0xff] %v163_v42 }
  0xd7   :  { %v200_v53 = vld [vmem:[#allocation2 + $0x28] sm:$0x1] }
  0xd9   :  { %v199_v47 = vld [vmem:[#allocation2 + $0x20] sm:$0x1] }
  0xdb   :  { %v202_v63 = vld [vmem:[#allocation2 + $0x38] sm:$0x1] }
  0xdd   :  { %v201_v58 = vld [vmem:[#allocation2 + $0x30] sm:$0x1] }
  0xe1   :  { %v269_v46 = vpop.f32.mrf.mxu1 }
  0xe2   :  { %v274_v48 = vrot.slane %v269_v46, 1  ;;  %v275_v49 = vrot.slane %v269_v46, 2  ;;  %v276_v50 = vrot.slane %v269_v46, 3  ;;  %v277_v51 = vrot.slane %v269_v46, 4 }
  0xe3   :  { %v278_v54 = vrot.slane %v269_v46, 5  ;;  %v279_v55 = vrot.slane %v269_v46, 6  ;;  %v289_v56 = vadd.f32 %v269_v46, %v195_v43  ;;  %v1564_v57 = vpop.f32.mrf.mxu1  ;;  %v280_v59 = vrot.slane %v269_v46, 7  ;;  %v314_v43 = vld [vmem:[#allocation2 + $0x9] sm:$0x1] }
  0xe4   :  { %v290_v60 = vadd.f32 %v274_v48, %v196_v44  ;;  %v291_v61 = vadd.f32 %v275_v49, %v197_v52  ;;  %v292_v62 = vadd.f32 %v276_v50, %v198_v45  ;;  %v293_v3 = vadd.f32 %v277_v51, %v199_v47  ;;  %v313_v45 = vld [vmem:[#allocation2 + $0x1] sm:$0x1]  ;;  %v315_v50 = vld [vmem:[#allocation2 + $0x11] sm:$0x1]  ;;  %v316_v51 = vld [vmem:[#allocation2 + $0x19] sm:$0x1] }
  0xe5   :  { %1816 = vtanh.f32 %v289_v56  ;;  %v294_v4 = vadd.f32 %v278_v54, %v200_v53  ;;  %v295_v5 = vadd.f32 %v279_v55, %v201_v58  ;;  %v296_v7 = vadd.f32 %v280_v59, %v202_v63  ;;  %v317_v56 = vld [vmem:[#allocation2 + $0x21] sm:$0x1]  ;;  %v319_v63 = vld [vmem:[#allocation2 + $0x31] sm:$0x1] }
  0xe6   :  { %1818 = vtanh.f32 %v290_v60 }
  0xe7   :  { %1820 = vtanh.f32 %v291_v61  ;;  %v318_v61 = vld [vmem:[#allocation2 + $0x29] sm:$0x1] }
  0xe8   :  { %1822 = vtanh.f32 %v292_v62 }
  0xe9   :  { %1824 = vtanh.f32 %v293_v3 }
  0xea   :  { %1826 = vtanh.f32 %v294_v4  ;;  %v320_v4 = vld [vmem:[#allocation2 + $0x39] sm:$0x1] }
  0xeb   :  { %1828 = vtanh.f32 %v295_v5 }
  0xec   :  { %1830 = vtanh.f32 %v296_v7 }
  0xf2   :  { %v1817_v9 = vpop.eup %1816 }
  0xf3   :  { %v1819_v11 = vpop.eup %1818  ;;  %305 = vst [vmem:[#allocation2] sm:$0x1] %v1817_v9 }
  0xf4   :  { %v1821_v13 = vpop.eup %1820  ;;  %306 = vst [vmem:[#allocation2 + $0x8] sm:$0x1] %v1819_v11  ;;  %v329_v15 = vrot.slane %v1819_v11, 7 }
  0xf5   :  { %v1823_v17 = vpop.eup %1822  ;;  %307 = vst [vmem:[#allocation2 + $0x10] sm:$0x1] %v1821_v13  ;;  %v332_v26 = vrot.slane %v1821_v13, 6 }
  0xf6   :  { %v1825_v27 = vpop.eup %1824  ;;  %308 = vst [vmem:[#allocation2 + $0x18] sm:$0x1] %v1823_v17  ;;  %v331_v28 = vsel %vm330_vm3, %v329_v15, %v1817_v9  ;;  %v335_v29 = vrot.slane %v1823_v17, 5 }
  0xf7   :  { %v1827_v30 = vpop.eup %1826  ;;  %309 = vst [vmem:[#allocation2 + $0x20] sm:$0x1] %v1825_v27  ;;  %v334_v31 = vsel %vm333_vm4, %v332_v26, %v331_v28  ;;  %v338_v32 = vrot.slane %v1825_v27, 4 }
  0xf8   :  { %v1829_v33 = vpop.eup %1828  ;;  %310 = vst [vmem:[#allocation2 + $0x28] sm:$0x1] %v1827_v30  ;;  %v337_v34 = vsel %vm336_vm5, %v335_v29, %v334_v31  ;;  %v341_v35 = vrot.slane %v1827_v30, 3 }
  0xf9   :  { %v1831_v36 = vpop.eup %1830  ;;  %311 = vst [vmem:[#allocation2 + $0x30] sm:$0x1] %v1829_v33  ;;  %v340_v37 = vsel %vm339_vm6, %v338_v32, %v337_v34  ;;  %v344_v38 = vrot.slane %v1829_v33, 2 }
  0xfa   :  { %312 = vst [vmem:[#allocation2 + $0x38] sm:$0x1] %v1831_v36  ;;  %v343_v39 = vsel %vm342_vm7, %v341_v35, %v340_v37  ;;  %v347_v40 = vrot.slane %v1831_v36, 1 }
  0xfb   :  { %v346_v41 = vsel %vm345_vm8, %v344_v38, %v343_v39 }
  0xfc   :  { %v349_v42 = vsel %vm348_vm9, %v347_v40, %v346_v41 }
  0xfd   :  { %1598 = vmatmul.mubr.f32.vlgmr.msra.gmra.mxu0 %v349_v42 }
  0xfe   :  { %1636 = vmatpush3.msra.mxu0 %v2043_v0  ;;  %1667 = vmatprep.mubr.msk.f32.mxu0 %vm2005_vm2, %v2004_v1 }
  0xff   :  { %1637 = vmatprep.subr.mxu0 %v2004_v1 }
 0x100   :  { %1638 = vmatpush3.msra.mxu0 %v2049_v2 }
 0x101   :  { %1639 = vmatprep.subr.mxu0 %v2004_v1 }
 0x102   :  { %1640 = vmatpush3.msra.mxu0 %v2065_v6 }
 0x103   :  { %1641 = vmatprep.subr.mxu0 %v2004_v1 }
 0x104   :  { %1642 = vmatpush3.msra.mxu0 %v2076_v8 }
 0x105   :  { %1643 = vmatprep.subr.mxu0 %v2004_v1 }
 0x106   :  { %1644 = vmatpush3.msra.mxu0 %v2088_v10 }
 0x107   :  { %1645 = vmatprep.subr.mxu0 %v2004_v1 }
 0x108   :  { %1646 = vmatpush3.msra.mxu0 %v2101_v12 }
 0x109   :  { %1647 = vmatprep.subr.mxu0 %v2004_v1 }
 0x10a   :  { %1648 = vmatpush3.msra.mxu0 %v2113_v14 }
 0x10b   :  { %1649 = vmatprep.subr.mxu0 %v2004_v1 }
 0x10c   :  { %1650 = vmatpush3.msra.mxu0 %v2125_v16 }
 0x10d   :  { %1651 = vmatprep.subr.mxu0 %v2004_v1 }
 0x10e   :  { %1652 = vmatpush3.msra.mxu0 %v2137_v18 }
 0x10f   :  { %1653 = vmatprep.subr.mxu0 %v2004_v1 }
 0x110   :  { %1654 = vmatpush3.msra.mxu0 %v2146_v19 }
 0x111   :  { %1655 = vmatprep.subr.mxu0 %v2004_v1 }
 0x112   :  { %1656 = vmatpush3.msra.mxu0 %v2155_v20 }
 0x113   :  { %1657 = vmatprep.subr.mxu0 %v2004_v1 }
 0x114   :  { %1658 = vmatpush3.msra.mxu0 %v2164_v21 }
 0x115   :  { %1659 = vmatprep.subr.mxu0 %v2004_v1 }
 0x116   :  { %1660 = vmatpush3.msra.mxu0 %v2173_v22 }
 0x117   :  { %1661 = vmatprep.subr.mxu0 %v2004_v1 }
 0x118   :  { %1662 = vmatpush3.msra.mxu0 %v2182_v23 }
 0x119   :  { %1663 = vmatprep.subr.mxu0 %v2004_v1 }
 0x11a   :  { %1664 = vmatpush3.msra.mxu0 %v2191_v24 }
 0x11b   :  { %1665 = vmatprep.subr.mxu0 %v2004_v1 }
 0x11c   :  { %1666 = vmatpush3.msra.mxu0 %v2200_v25 }
 0x11d   :  { %1705 = vmatprep.subr.mxu0 %v2004_v1 }
 0x1bd   :  { %v417_v44 = vpop.f32.mrf.mxu0 }
 0x1be   :  { %v422_v46 = vrot.slane %v417_v44, 1  ;;  %v423_v47 = vrot.slane %v417_v44, 2  ;;  %v424_v48 = vrot.slane %v417_v44, 3  ;;  %v425_v49 = vrot.slane %v417_v44, 4 }
 0x1bf   :  { %v426_v52 = vrot.slane %v417_v44, 5  ;;  %v427_v53 = vrot.slane %v417_v44, 6  ;;  %v437_v54 = vadd.f32 %v417_v44, %v313_v45  ;;  %v1599_v55 = vpop.f32.mrf.mxu0  ;;  %v428_v57 = vrot.slane %v417_v44, 7  ;;  %v461_v45 = vld [vmem:[#allocation2 + $0x2] sm:$0x1] }
 0x1c0   :  { %v438_v58 = vadd.f32 %v422_v46, %v314_v43  ;;  %v439_v59 = vadd.f32 %v423_v47, %v315_v50  ;;  %v440_v60 = vadd.f32 %v424_v48, %v316_v51  ;;  %v441_v62 = vadd.f32 %v425_v49, %v317_v56  ;;  %v462_v43 = vld [vmem:[#allocation2 + $0xa] sm:$0x1]  ;;  %v463_v50 = vld [vmem:[#allocation2 + $0x12] sm:$0x1]  ;;  %v464_v51 = vld [vmem:[#allocation2 + $0x1a] sm:$0x1] }
 0x1c1   :  { %1832 = vtanh.f32 %v437_v54  ;;  %v442_v3 = vadd.f32 %v426_v52, %v318_v61  ;;  %v443_v5 = vadd.f32 %v427_v53, %v319_v63  ;;  %v444_v7 = vadd.f32 %v428_v57, %v320_v4  ;;  %v465_v56 = vld [vmem:[#allocation2 + $0x22] sm:$0x1]  ;;  %v466_v61 = vld [vmem:[#allocation2 + $0x2a] sm:$0x1]  ;;  %v467_v63 = vld [vmem:[#allocation2 + $0x32] sm:$0x1] }
 0x1c2   :  { %1834 = vtanh.f32 %v438_v58  ;;  %v468_v4 = vld [vmem:[#allocation2 + $0x3a] sm:$0x1] }
 0x1c3   :  { %1836 = vtanh.f32 %v439_v59 }
 0x1c4   :  { %1838 = vtanh.f32 %v440_v60 }
 0x1c5   :  { %1840 = vtanh.f32 %v441_v62 }
 0x1c6   :  { %1842 = vtanh.f32 %v442_v3 }
 0x1c7   :  { %1844 = vtanh.f32 %v443_v5 }
 0x1c8   :  { %1846 = vtanh.f32 %v444_v7 }
 0x1ce   :  { %v1833_v9 = vpop.eup %1832 }
 0x1cf   :  { %v1835_v11 = vpop.eup %1834  ;;  %453 = vst [vmem:[#allocation2 + $0x1] sm:$0x1] %v1833_v9 }
 0x1d0   :  { %v1837_v13 = vpop.eup %1836  ;;  %454 = vst [vmem:[#allocation2 + $0x9] sm:$0x1] %v1835_v11  ;;  %v477_v15 = vrot.slane %v1835_v11, 7 }
 0x1d1   :  { %v1839_v17 = vpop.eup %1838  ;;  %455 = vst [vmem:[#allocation2 + $0x11] sm:$0x1] %v1837_v13  ;;  %v479_v26 = vrot.slane %v1837_v13, 6 }
 0x1d2   :  { %v1841_v27 = vpop.eup %1840  ;;  %456 = vst [vmem:[#allocation2 + $0x19] sm:$0x1] %v1839_v17  ;;  %v478_v28 = vsel %vm330_vm3, %v477_v15, %v1833_v9  ;;  %v481_v29 = vrot.slane %v1839_v17, 5 }
 0x1d3   :  { %v1843_v30 = vpop.eup %1842  ;;  %457 = vst [vmem:[#allocation2 + $0x21] sm:$0x1] %v1841_v27  ;;  %v480_v31 = vsel %vm333_vm4, %v479_v26, %v478_v28  ;;  %v483_v32 = vrot.slane %v1841_v27, 4 }
 0x1d4   :  { %v1845_v33 = vpop.eup %1844  ;;  %458 = vst [vmem:[#allocation2 + $0x29] sm:$0x1] %v1843_v30  ;;  %v482_v34 = vsel %vm336_vm5, %v481_v29, %v480_v31  ;;  %v485_v35 = vrot.slane %v1843_v30, 3 }
 0x1d5   :  { %v1847_v36 = vpop.eup %1846  ;;  %459 = vst [vmem:[#allocation2 + $0x31] sm:$0x1] %v1845_v33  ;;  %v484_v37 = vsel %vm339_vm6, %v483_v32, %v482_v34  ;;  %v487_v38 = vrot.slane %v1845_v33, 2 }
 0x1d6   :  { %460 = vst [vmem:[#allocation2 + $0x39] sm:$0x1] %v1847_v36  ;;  %v486_v39 = vsel %vm342_vm7, %v485_v35, %v484_v37  ;;  %v489_v40 = vrot.slane %v1847_v36, 1 }
 0x1d7   :  { %v488_v41 = vsel %vm345_vm8, %v487_v38, %v486_v39 }
 0x1d8   :  { %v490_v42 = vsel %vm348_vm9, %v489_v40, %v488_v41 }
 0x1d9   :  { %1633 = vmatmul.mubr.f32.vlgmr.msra.gmra.mxu1 %v490_v42 }
 0x1da   :  { %1671 = vmatpush3.msra.mxu1 %v2043_v0  ;;  %1702 = vmatprep.mubr.msk.f32.mxu1 %vm2005_vm2, %v2004_v1 }
 0x1db   :  { %1672 = vmatprep.subr.mxu1 %v2004_v1 }
 0x1dc   :  { %1673 = vmatpush3.msra.mxu1 %v2049_v2 }
 0x1dd   :  { %1674 = vmatprep.subr.mxu1 %v2004_v1 }
 0x1de   :  { %1675 = vmatpush3.msra.mxu1 %v2065_v6 }
 0x1df   :  { %1676 = vmatprep.subr.mxu1 %v2004_v1 }
 0x1e0   :  { %1677 = vmatpush3.msra.mxu1 %v2076_v8 }
 0x1e1   :  { %1678 = vmatprep.subr.mxu1 %v2004_v1 }
 0x1e2   :  { %1679 = vmatpush3.msra.mxu1 %v2088_v10 }
 0x1e3   :  { %1680 = vmatprep.subr.mxu1 %v2004_v1 }
 0x1e4   :  { %1681 = vmatpush3.msra.mxu1 %v2101_v12 }
 0x1e5   :  { %1682 = vmatprep.subr.mxu1 %v2004_v1 }
 0x1e6   :  { %1683 = vmatpush3.msra.mxu1 %v2113_v14 }
 0x1e7   :  { %1684 = vmatprep.subr.mxu1 %v2004_v1 }
 0x1e8   :  { %1685 = vmatpush3.msra.mxu1 %v2125_v16 }
 0x1e9   :  { %1686 = vmatprep.subr.mxu1 %v2004_v1 }
 0x1ea   :  { %1687 = vmatpush3.msra.mxu1 %v2137_v18 }
 0x1eb   :  { %1688 = vmatprep.subr.mxu1 %v2004_v1 }
 0x1ec   :  { %1689 = vmatpush3.msra.mxu1 %v2146_v19 }
 0x1ed   :  { %1690 = vmatprep.subr.mxu1 %v2004_v1 }
 0x1ee   :  { %1691 = vmatpush3.msra.mxu1 %v2155_v20 }
 0x1ef   :  { %1692 = vmatprep.subr.mxu1 %v2004_v1 }
 0x1f0   :  { %1693 = vmatpush3.msra.mxu1 %v2164_v21 }
 0x1f1   :  { %1694 = vmatprep.subr.mxu1 %v2004_v1 }
 0x1f2   :  { %1695 = vmatpush3.msra.mxu1 %v2173_v22 }
 0x1f3   :  { %1696 = vmatprep.subr.mxu1 %v2004_v1 }
 0x1f4   :  { %1697 = vmatpush3.msra.mxu1 %v2182_v23 }
 0x1f5   :  { %1698 = vmatprep.subr.mxu1 %v2004_v1 }
 0x1f6   :  { %1699 = vmatpush3.msra.mxu1 %v2191_v24 }
 0x1f7   :  { %1700 = vmatprep.subr.mxu1 %v2004_v1 }
 0x1f8   :  { %1701 = vmatpush3.msra.mxu1 %v2200_v25 }
 0x1f9   :  { %1740 = vmatprep.subr.mxu1 %v2004_v1 }
 0x299   :  { %v558_v44 = vpop.f32.mrf.mxu1 }
 0x29a   :  { %v563_v46 = vrot.slane %v558_v44, 1  ;;  %v564_v47 = vrot.slane %v558_v44, 2  ;;  %v565_v48 = vrot.slane %v558_v44, 3  ;;  %v566_v49 = vrot.slane %v558_v44, 4 }
 0x29b   :  { %v567_v52 = vrot.slane %v558_v44, 5  ;;  %v568_v53 = vrot.slane %v558_v44, 6  ;;  %v578_v54 = vadd.f32 %v558_v44, %v461_v45  ;;  %v1634_v55 = vpop.f32.mrf.mxu1  ;;  %v569_v57 = vrot.slane %v558_v44, 7  ;;  %v604_v45 = vld [vmem:[#allocation2 + $0x13] sm:$0x1] }
 0x29c   :  { %v579_v58 = vadd.f32 %v563_v46, %v462_v43  ;;  %v580_v59 = vadd.f32 %v564_v47, %v463_v50  ;;  %v581_v60 = vadd.f32 %v565_v48, %v464_v51  ;;  %v582_v62 = vadd.f32 %v566_v49, %v465_v56  ;;  %v605_v46 = vld [vmem:[#allocation2 + $0x1b] sm:$0x1]  ;;  %v606_v51 = vld [vmem:[#allocation2 + $0x23] sm:$0x1]  ;;  %v607_v56 = vld [vmem:[#allocation2 + $0x2b] sm:$0x1] }
 0x29d   :  { %1848 = vtanh.f32 %v578_v54  ;;  %v583_v3 = vadd.f32 %v567_v52, %v466_v61  ;;  %v584_v5 = vadd.f32 %v568_v53, %v467_v63  ;;  %v585_v7 = vadd.f32 %v569_v57, %v468_v4 }
 0x29e   :  { %1850 = vtanh.f32 %v579_v58  ;;  %v608_v58 = vld [vmem:[#allocation2 + $0x33] sm:$0x1] }
 0x29f   :  { %1852 = vtanh.f32 %v580_v59 }
 0x2a0   :  { %1854 = vtanh.f32 %v581_v60  ;;  %v609_v60 = vld [vmem:[#allocation2 + $0x3b] sm:$0x1] }
 0x2a1   :  { %1856 = vtanh.f32 %v582_v62 }
 0x2a2   :  { %1858 = vtanh.f32 %v583_v3 }
 0x2a3   :  { %1860 = vtanh.f32 %v584_v5 }
 0x2a4   :  { %1862 = vtanh.f32 %v585_v7 }
 0x2aa   :  { %v1849_v9 = vpop.eup %1848 }
 0x2ab   :  { %v1851_v11 = vpop.eup %1850  ;;  %594 = vst [vmem:[#allocation2 + $0x2] sm:$0x1] %v1849_v9 }
 0x2ac   :  { %v1853_v13 = vpop.eup %1852  ;;  %595 = vst [vmem:[#allocation2 + $0xa] sm:$0x1] %v1851_v11  ;;  %v618_v15 = vrot.slane %v1851_v11, 7 }
 0x2ad   :  { %v1855_v17 = vpop.eup %1854  ;;  %596 = vst [vmem:[#allocation2 + $0x12] sm:$0x1] %v1853_v13  ;;  %v620_v26 = vrot.slane %v1853_v13, 6 }
 0x2ae   :  { %v1857_v27 = vpop.eup %1856  ;;  %597 = vst [vmem:[#allocation2 + $0x1a] sm:$0x1] %v1855_v17  ;;  %v619_v28 = vsel %vm330_vm3, %v618_v15, %v1849_v9  ;;  %v622_v29 = vrot.slane %v1855_v17, 5 }
 0x2af   :  { %v1859_v30 = vpop.eup %1858  ;;  %598 = vst [vmem:[#allocation2 + $0x22] sm:$0x1] %v1857_v27  ;;  %v621_v31 = vsel %vm333_vm4, %v620_v26, %v619_v28  ;;  %v624_v32 = vrot.slane %v1857_v27, 4 }
 0x2b0   :  { %v1861_v33 = vpop.eup %1860  ;;  %599 = vst [vmem:[#allocation2 + $0x2a] sm:$0x1] %v1859_v30  ;;  %v623_v34 = vsel %vm336_vm5, %v622_v29, %v621_v31  ;;  %v626_v35 = vrot.slane %v1859_v30, 3 }
 0x2b1   :  { %v1863_v36 = vpop.eup %1862  ;;  %600 = vst [vmem:[#allocation2 + $0x32] sm:$0x1] %v1861_v33  ;;  %v625_v37 = vsel %vm339_vm6, %v624_v32, %v623_v34  ;;  %v628_v38 = vrot.slane %v1861_v33, 2 }
 0x2b2   :  { %601 = vst [vmem:[#allocation2 + $0x3a] sm:$0x1] %v1863_v36  ;;  %v627_v39 = vsel %vm342_vm7, %v626_v35, %v625_v37  ;;  %v630_v40 = vrot.slane %v1863_v36, 1 }
 0x2b3   :  { %v629_v41 = vsel %vm345_vm8, %v628_v38, %v627_v39  ;;  %v2396_v38 = vld [vmem:[%s2542_s2 + $0x78] sm:$0xff]  ;;  %v2405_v39 = vld [vmem:[%s2542_s2 + $0x70] sm:$0xff] }
 0x2b4   :  { %v631_v42 = vsel %vm348_vm9, %v630_v40, %v629_v41  ;;  %v2412_v40 = vld [vmem:[%s2542_s2 + $0x68] sm:$0xff]  ;;  %v2419_v41 = vld [vmem:[%s2542_s2 + $0x60] sm:$0xff] }
 0x2b5   :  { %1668 = vmatmul.mubr.f32.vlgmr.msra.gmra.mxu0 %v631_v42  ;;  %v2426_v42 = vld [vmem:[%s2542_s2 + $0x58] sm:$0xff] }
 0x2b6   :  { %1706 = vmatpush3.msra.mxu0 %v2043_v0  ;;  %1737 = vmatprep.mubr.msk.f32.mxu0 %vm2005_vm2, %v2004_v1  ;;  %v603_v0 = vld [vmem:[#allocation2 + $0xb] sm:$0x1] }
 0x2b7   :  { %1707 = vmatprep.subr.mxu0 %v2004_v1 }
 0x2b8   :  { %1708 = vmatpush3.msra.mxu0 %v2049_v2 }
 0x2b9   :  { %1709 = vmatprep.subr.mxu0 %v2004_v1 }
 0x2ba   :  { %1710 = vmatpush3.msra.mxu0 %v2065_v6  ;;  %v602_v6 = vld [vmem:[#allocation2 + $0x3] sm:$0x1] }
 0x2bb   :  { %1711 = vmatprep.subr.mxu0 %v2004_v1 }
 0x2bc   :  { %1712 = vmatpush3.msra.mxu0 %v2076_v8 }
 0x2bd   :  { %1713 = vmatprep.subr.mxu0 %v2004_v1 }
 0x2be   :  { %1714 = vmatpush3.msra.mxu0 %v2088_v10 }
 0x2bf   :  { %1715 = vmatprep.subr.mxu0 %v2004_v1 }
 0x2c0   :  { %1716 = vmatpush3.msra.mxu0 %v2101_v12 }
 0x2c1   :  { %1717 = vmatprep.subr.mxu0 %v2004_v1 }
 0x2c2   :  { %1718 = vmatpush3.msra.mxu0 %v2113_v14 }
 0x2c3   :  { %1719 = vmatprep.subr.mxu0 %v2004_v1 }
 0x2c4   :  { %1720 = vmatpush3.msra.mxu0 %v2125_v16 }
 0x2c5   :  { %1721 = vmatprep.subr.mxu0 %v2004_v1 }
 0x2c6   :  { %1722 = vmatpush3.msra.mxu0 %v2137_v18 }
 0x2c7   :  { %1723 = vmatprep.subr.mxu0 %v2004_v1 }
 0x2c8   :  { %1724 = vmatpush3.msra.mxu0 %v2146_v19 }
 0x2c9   :  { %1725 = vmatprep.subr.mxu0 %v2004_v1 }
 0x2ca   :  { %1726 = vmatpush3.msra.mxu0 %v2155_v20 }
 0x2cb   :  { %1727 = vmatprep.subr.mxu0 %v2004_v1 }
 0x2cc   :  { %1728 = vmatpush3.msra.mxu0 %v2164_v21 }
 0x2cd   :  { %1729 = vmatprep.subr.mxu0 %v2004_v1 }
 0x2ce   :  { %1730 = vmatpush3.msra.mxu0 %v2173_v22 }
 0x2cf   :  { %1731 = vmatprep.subr.mxu0 %v2004_v1 }
 0x2d0   :  { %1732 = vmatpush3.msra.mxu0 %v2182_v23 }
 0x2d1   :  { %1733 = vmatprep.subr.mxu0 %v2004_v1 }
 0x2d2   :  { %1734 = vmatpush3.msra.mxu0 %v2191_v24 }
 0x2d3   :  { %1735 = vmatprep.subr.mxu0 %v2004_v1 }
 0x2d4   :  { %1736 = vmatpush3.msra.mxu0 %v2200_v25 }
 0x2d5   :  { %1775 = vmatprep.subr.mxu0 %v2004_v1 }
 0x375   :  { %v699_v2 = vpop.f32.mrf.mxu0 }
 0x376   :  { %v704_v8 = vrot.slane %v699_v2, 1  ;;  %v705_v10 = vrot.slane %v699_v2, 2  ;;  %v706_v43 = vrot.slane %v699_v2, 3  ;;  %v707_v44 = vrot.slane %v699_v2, 4 }
 0x377   :  { %v708_v47 = vrot.slane %v699_v2, 5  ;;  %v709_v48 = vrot.slane %v699_v2, 6  ;;  %v719_v49 = vadd.f32 %v699_v2, %v602_v6  ;;  %v1669_v50 = vpop.f32.mrf.mxu0  ;;  %v710_v52 = vrot.slane %v699_v2, 7 }
 0x378   :  { %v720_v53 = vadd.f32 %v704_v8, %v603_v0  ;;  %v721_v54 = vadd.f32 %v705_v10, %v604_v45  ;;  %v722_v55 = vadd.f32 %v706_v43, %v605_v46  ;;  %v723_v57 = vadd.f32 %v707_v44, %v606_v51  ;;  %v746_v0 = vld [vmem:[#allocation2 + $0x1c] sm:$0x1]  ;;  %v747_v10 = vld [vmem:[#allocation2 + $0x24] sm:$0x1]  ;;  %v748_v46 = vld [vmem:[#allocation2 + $0x2c] sm:$0x1] }
 0x379   :  { %1864 = vtanh.f32 %v719_v49  ;;  %v724_v59 = vadd.f32 %v708_v47, %v607_v56  ;;  %v725_v61 = vadd.f32 %v709_v48, %v608_v58  ;;  %v726_v62 = vadd.f32 %v710_v52, %v609_v60  ;;  %v749_v47 = vld [vmem:[#allocation2 + $0x34] sm:$0x1]  ;;  %v750_v49 = vld [vmem:[#allocation2 + $0x3c] sm:$0x1] }
 0x37a   :  { %1866 = vtanh.f32 %v720_v53 }
 0x37b   :  { %1868 = vtanh.f32 %v721_v54 }
 0x37c   :  { %1870 = vtanh.f32 %v722_v55 }
 0x37d   :  { %1872 = vtanh.f32 %v723_v57 }
 0x37e   :  { %1874 = vtanh.f32 %v724_v59 }
 0x37f   :  { %1876 = vtanh.f32 %v725_v61 }
 0x380   :  { %1878 = vtanh.f32 %v726_v62 }
 0x386   :  { %v1865_v63 = vpop.eup %1864 }
 0x387   :  { %v1867_v3 = vpop.eup %1866  ;;  %735 = vst [vmem:[#allocation2 + $0x3] sm:$0x1] %v1865_v63 }
 0x388   :  { %v1869_v4 = vpop.eup %1868  ;;  %736 = vst [vmem:[#allocation2 + $0xb] sm:$0x1] %v1867_v3  ;;  %v759_v5 = vrot.slane %v1867_v3, 7 }
 0x389   :  { %v1871_v7 = vpop.eup %1870  ;;  %737 = vst [vmem:[#allocation2 + $0x13] sm:$0x1] %v1869_v4  ;;  %v761_v9 = vrot.slane %v1869_v4, 6 }
 0x38a   :  { %v1873_v11 = vpop.eup %1872  ;;  %738 = vst [vmem:[#allocation2 + $0x1b] sm:$0x1] %v1871_v7  ;;  %v760_v13 = vsel %vm330_vm3, %v759_v5, %v1865_v63  ;;  %v763_v15 = vrot.slane %v1871_v7, 5 }
 0x38b   :  { %v1875_v17 = vpop.eup %1874  ;;  %739 = vst [vmem:[#allocation2 + $0x23] sm:$0x1] %v1873_v11  ;;  %v762_v26 = vsel %vm333_vm4, %v761_v9, %v760_v13  ;;  %v765_v27 = vrot.slane %v1873_v11, 4 }
 0x38c   :  { %v1877_v28 = vpop.eup %1876  ;;  %740 = vst [vmem:[#allocation2 + $0x2b] sm:$0x1] %v1875_v17  ;;  %v764_v29 = vsel %vm336_vm5, %v763_v15, %v762_v26  ;;  %v767_v30 = vrot.slane %v1875_v17, 3 }
 0x38d   :  { %v1879_v31 = vpop.eup %1878  ;;  %741 = vst [vmem:[#allocation2 + $0x33] sm:$0x1] %v1877_v28  ;;  %v766_v32 = vsel %vm339_vm6, %v765_v27, %v764_v29  ;;  %v769_v33 = vrot.slane %v1877_v28, 2  ;;  %v1949_v27 = vld [vmem:[%s2542_s2 + $0x50] sm:$0xff]  ;;  %v1950_v28 = vld [vmem:[%s2542_s2 + $0x48] sm:$0xff]  ;;  %v1951_v29 = vld [vmem:[%s2542_s2 + $0x40] sm:$0xff] }
 0x38e   :  { %742 = vst [vmem:[#allocation2 + $0x3b] sm:$0x1] %v1879_v31  ;;  %v768_v34 = vsel %vm342_vm7, %v767_v30, %v766_v32  ;;  %v771_v35 = vrot.slane %v1879_v31, 1  ;;  %v1952_v30 = vld [vmem:[%s2542_s2 + $0x38] sm:$0xff]  ;;  %v1953_v31 = vld [vmem:[%s2542_s2 + $0x30] sm:$0xff]  ;;  %v1954_v32 = vld [vmem:[%s2542_s2 + $0x28] sm:$0xff] }
 0x38f   :  { %v770_v36 = vsel %vm345_vm8, %v769_v33, %v768_v34  ;;  %v1955_v33 = vld [vmem:[%s2542_s2 + $0x20] sm:$0xff]  ;;  %v1956_v34 = vld [vmem:[%s2542_s2 + $0x18] sm:$0xff] }
 0x390   :  { %v772_v37 = vsel %vm348_vm9, %v771_v35, %v770_v36  ;;  %v1957_v35 = vld [vmem:[%s2542_s2 + $0x10] sm:$0xff]  ;;  %v1958_v36 = vld [vmem:[%s2542_s2 + $0x8] sm:$0xff] }
 0x391   :  { %1703 = vmatmul.mubr.f32.vlgmr.msra.gmra.mxu1 %v772_v37  ;;  %v1959_v37 = vld [vmem:[%s2542_s2] sm:$0xff]  ;;  %s2006_s2 = smov [#allocation2]  }
 0x392   :  { %1741 = vmatpush3.msra.mxu1 %v2396_v38  ;;  %1772 = vmatprep.mubr.msk.f32.mxu1 %vm2005_vm2, %v2004_v1  ;;  %s1336_s20 = sshll.u32 %s2006_s2, 4  ;;  %s1337_s20 = int_to_ptr.vmem [resolvable:$true] %s1336_s20 }
 0x393   :  { %1742 = vmatprep.subr.mxu1 %v2004_v1  ;;  %s1960_s23 = scalar_lea.vmem %s1337_s20, 1024  ;;  %p1965_p1 = scmp.lt.s32.totalorder %s1337_s20, %s1337_s20 }
 0x394   :  { %1743 = vmatpush3.msra.mxu1 %v2405_v39  ;;  %p1961_p0 = scmp.ne.s32.totalorder %s1337_s20, %s1960_s23  ;;  %p1966_p2 = scmp.lt.s32.totalorder %s1960_s23, %s1960_s23 }
 0x395   :  { %1744 = vmatprep.subr.mxu1 %v2004_v1 }
 0x396   :  { %1745 = vmatpush3.msra.mxu1 %v2412_v40  ;;  %p1967_p3 = por %p1966_p2, %p1965_p1 }
 0x397   :  { %1746 = vmatprep.subr.mxu1 %v2004_v1 }
 0x398   :  { %1747 = vmatpush3.msra.mxu1 %v2419_v41  ;;  %p1968_p4 = pnand %p1967_p3, %p1961_p0 }
 0x399   :  { %1748 = vmatprep.subr.mxu1 %v2004_v1 }
 0x39a   :  { %1749 = vmatpush3.msra.mxu1 %v2426_v42 }
 0x39b   :  { %1750 = vmatprep.subr.mxu1 %v2004_v1 }
 0x39c   :  { %1751 = vmatpush3.msra.mxu1 %v2101_v12  ;;  %v744_v12 = vld [vmem:[#allocation2 + $0xc] sm:$0x1] }
 0x39d   :  { %1752 = vmatprep.subr.mxu1 %v2004_v1 }
 0x39e   :  { %1753 = vmatpush3.msra.mxu1 %v2113_v14 }
 0x39f   :  { %1754 = vmatprep.subr.mxu1 %v2004_v1 }
 0x3a0   :  { %1755 = vmatpush3.msra.mxu1 %v2125_v16  ;;  %v743_v16 = vld [vmem:[#allocation2 + $0x4] sm:$0x1] }
 0x3a1   :  { %1756 = vmatprep.subr.mxu1 %v2004_v1 }
 0x3a2   :  { %1757 = vmatpush3.msra.mxu1 %v2137_v18 }
 0x3a3   :  { %1758 = vmatprep.subr.mxu1 %v2004_v1 }
 0x3a4   :  { %1759 = vmatpush3.msra.mxu1 %v2146_v19 }
 0x3a5   :  { %1760 = vmatprep.subr.mxu1 %v2004_v1 }
 0x3a6   :  { %1761 = vmatpush3.msra.mxu1 %v2155_v20 }
 0x3a7   :  { %1762 = vmatprep.subr.mxu1 %v2004_v1 }
 0x3a8   :  { %1763 = vmatpush3.msra.mxu1 %v2164_v21 }
 0x3a9   :  { %1764 = vmatprep.subr.mxu1 %v2004_v1 }
 0x3aa   :  { %1765 = vmatpush3.msra.mxu1 %v2173_v22  ;;  %v745_v22 = vld [vmem:[#allocation2 + $0x14] sm:$0x1] }
 0x3ab   :  { %1766 = vmatprep.subr.mxu1 %v2004_v1 }
 0x3ac   :  { %1767 = vmatpush3.msra.mxu1 %v2182_v23 }
 0x3ad   :  { %1768 = vmatprep.subr.mxu1 %v2004_v1 }
 0x3ae   :  { %1769 = vmatpush3.msra.mxu1 %v2191_v24 }
 0x3af   :  { %1770 = vmatprep.subr.mxu1 %v2004_v1 }
 0x3b0   :  { %1771 = vmatpush3.msra.mxu1 %v2200_v25 }
 0x451   :  { %v840_v14 = vpop.f32.mrf.mxu1 }
 0x452   :  { %v845_v18 = vrot.slane %v840_v14, 1  ;;  %v846_v19 = vrot.slane %v840_v14, 2  ;;  %v847_v20 = vrot.slane %v840_v14, 3  ;;  %v848_v21 = vrot.slane %v840_v14, 4 }
 0x453   :  { %v849_v2 = vrot.slane %v840_v14, 5  ;;  %v850_v6 = vrot.slane %v840_v14, 6  ;;  %v860_v23 = vadd.f32 %v840_v14, %v743_v16  ;;  %v1704_v8 = vpop.f32.mrf.mxu1  ;;  %v851_v43 = vrot.slane %v840_v14, 7  ;;  %v886_v16 = vld [vmem:[#allocation2 + $0x15] sm:$0x1] }
 0x454   :  { %v861_v24 = vadd.f32 %v845_v18, %v744_v12  ;;  %v862_v44 = vadd.f32 %v846_v19, %v745_v22  ;;  %v863_v45 = vadd.f32 %v847_v20, %v746_v0  ;;  %v864_v25 = vadd.f32 %v848_v21, %v747_v10  ;;  %v887_v18 = vld [vmem:[#allocation2 + $0x1d] sm:$0x1]  ;;  %v888_v0 = vld [vmem:[#allocation2 + $0x25] sm:$0x1]  ;;  %v889_v8 = vld [vmem:[#allocation2 + $0x2d] sm:$0x1] }
 0x455   :  { %1880 = vtanh.f32 %v860_v23  ;;  %v865_v48 = vadd.f32 %v849_v2, %v748_v46  ;;  %v866_v50 = vadd.f32 %v850_v6, %v749_v47  ;;  %v867_v51 = vadd.f32 %v851_v43, %v750_v49  ;;  %v890_v43 = vld [vmem:[#allocation2 + $0x35] sm:$0x1] }
 0x456   :  { %1882 = vtanh.f32 %v861_v24 }
 0x457   :  { %1884 = vtanh.f32 %v862_v44  ;;  %v891_v44 = vld [vmem:[#allocation2 + $0x3d] sm:$0x1] }
 0x458   :  { %1886 = vtanh.f32 %v863_v45 }
 0x459   :  { %1888 = vtanh.f32 %v864_v25 }
 0x45a   :  { %1890 = vtanh.f32 %v865_v48 }
 0x45b   :  { %1892 = vtanh.f32 %v866_v50 }
 0x45c   :  { %1894 = vtanh.f32 %v867_v51 }
 0x462   :  { %v1881_v52 = vpop.eup %1880 }
 0x463   :  { %v1883_v53 = vpop.eup %1882  ;;  %876 = vst [vmem:[#allocation2 + $0x4] sm:$0x1] %v1881_v52 }
 0x464   :  { %v1885_v54 = vpop.eup %1884  ;;  %877 = vst [vmem:[#allocation2 + $0xc] sm:$0x1] %v1883_v53  ;;  %v900_v55 = vrot.slane %v1883_v53, 7 }
 0x465   :  { %v1887_v56 = vpop.eup %1886  ;;  %878 = vst [vmem:[#allocation2 + $0x14] sm:$0x1] %v1885_v54  ;;  %v902_v57 = vrot.slane %v1885_v54, 6 }
 0x466   :  { %v1889_v58 = vpop.eup %1888  ;;  %879 = vst [vmem:[#allocation2 + $0x1c] sm:$0x1] %v1887_v56  ;;  %v901_v59 = vsel %vm330_vm3, %v900_v55, %v1881_v52  ;;  %v904_v60 = vrot.slane %v1887_v56, 5 }
 0x467   :  { %v1891_v61 = vpop.eup %1890  ;;  %880 = vst [vmem:[#allocation2 + $0x24] sm:$0x1] %v1889_v58  ;;  %v903_v62 = vsel %vm333_vm4, %v902_v57, %v901_v59  ;;  %v906_v63 = vrot.slane %v1889_v58, 4 }
 0x468   :  { %v1893_v3 = vpop.eup %1892  ;;  %881 = vst [vmem:[#allocation2 + $0x2c] sm:$0x1] %v1891_v61  ;;  %v905_v4 = vsel %vm336_vm5, %v904_v60, %v903_v62  ;;  %v908_v5 = vrot.slane %v1891_v61, 3 }
 0x469   :  { %v1895_v7 = vpop.eup %1894  ;;  %882 = vst [vmem:[#allocation2 + $0x34] sm:$0x1] %v1893_v3  ;;  %v907_v9 = vsel %vm339_vm6, %v906_v63, %v905_v4  ;;  %v910_v11 = vrot.slane %v1893_v3, 2 }
 0x46a   :  { %883 = vst [vmem:[#allocation2 + $0x3c] sm:$0x1] %v1895_v7  ;;  %v909_v13 = vsel %vm342_vm7, %v908_v5, %v907_v9  ;;  %v912_v15 = vrot.slane %v1895_v7, 1  ;;  %v1025_v9 = vld [vmem:[#allocation2 + $0x6] sm:$0x1] }
 0x46b   :  { %v911_v17 = vsel %vm345_vm8, %v910_v11, %v909_v13  ;;  %v1026_v13 = vld [vmem:[#allocation2 + $0xe] sm:$0x1] }
 0x46c   :  { %v913_v26 = vsel %vm348_vm9, %v912_v15, %v911_v17 }
 0x46d   :  { %1738 = vmatmul.mubr.f32.vlgmr.msra.gmra.mxu0 %v913_v26 }
 0x46e   :  { %1776 = vmatpush3.msra.mxu0 %v2396_v38  ;;  %1807 = vmatprep.mubr.msk.f32.mxu0 %vm2005_vm2, %v2004_v1  ;;  %v885_v38 = vld [vmem:[#allocation2 + $0xd] sm:$0x1] }
 0x46f   :  { %1777 = vmatprep.subr.mxu0 %v2004_v1 }
 0x470   :  { %1778 = vmatpush3.msra.mxu0 %v2405_v39 }
 0x471   :  { %1779 = vmatprep.subr.mxu0 %v2004_v1 }
 0x472   :  { %1780 = vmatpush3.msra.mxu0 %v2412_v40  ;;  %v884_v40 = vld [vmem:[#allocation2 + $0x5] sm:$0x1] }
 0x473   :  { %1781 = vmatprep.subr.mxu0 %v2004_v1 }
 0x474   :  { %1782 = vmatpush3.msra.mxu0 %v2419_v41 }
 0x475   :  { %1783 = vmatprep.subr.mxu0 %v2004_v1 }
 0x476   :  { %1784 = vmatpush3.msra.mxu0 %v2426_v42 }
 0x477   :  { %1785 = vmatprep.subr.mxu0 %v2004_v1 }
 0x478   :  { %1786 = vmatpush3.msra.mxu0 %v1949_v27 }
 0x479   :  { %1787 = vmatprep.subr.mxu0 %v2004_v1 }
 0x47a   :  { %1788 = vmatpush3.msra.mxu0 %v1950_v28  ;;  %v1027_v28 = vld [vmem:[#allocation2 + $0x16] sm:$0x1] }
 0x47b   :  { %1789 = vmatprep.subr.mxu0 %v2004_v1 }
 0x47c   :  { %1790 = vmatpush3.msra.mxu0 %v1951_v29  ;;  %v1028_v29 = vld [vmem:[#allocation2 + $0x1e] sm:$0x1] }
 0x47d   :  { %1791 = vmatprep.subr.mxu0 %v2004_v1 }
 0x47e   :  { %1792 = vmatpush3.msra.mxu0 %v1952_v30 }
 0x47f   :  { %1793 = vmatprep.subr.mxu0 %v2004_v1 }
 0x480   :  { %1794 = vmatpush3.msra.mxu0 %v1953_v31 }
 0x481   :  { %1795 = vmatprep.subr.mxu0 %v2004_v1 }
 0x482   :  { %1796 = vmatpush3.msra.mxu0 %v1954_v32 }
 0x483   :  { %1797 = vmatprep.subr.mxu0 %v2004_v1 }
 0x484   :  { %1798 = vmatpush3.msra.mxu0 %v1955_v33 }
 0x485   :  { %1799 = vmatprep.subr.mxu0 %v2004_v1 }
 0x486   :  { %1800 = vmatpush3.msra.mxu0 %v1956_v34  ;;  %v1029_v34 = vld [vmem:[#allocation2 + $0x26] sm:$0x1] }
 0x487   :  { %1801 = vmatprep.subr.mxu0 %v2004_v1 }
 0x488   :  { %1802 = vmatpush3.msra.mxu0 %v1957_v35 }
 0x489   :  { %1803 = vmatprep.subr.mxu0 %v2004_v1 }
 0x48a   :  { %1804 = vmatpush3.msra.mxu0 %v1958_v36 }
 0x48b   :  { %1805 = vmatprep.subr.mxu0 %v2004_v1 }
 0x48c   :  { %1806 = vmatpush3.msra.mxu0 %v1959_v37 }
 0x52d   :  { %v981_v39 = vpop.f32.mrf.mxu0 }
 0x52e   :  { %v986_v41 = vrot.slane %v981_v39, 1  ;;  %v987_v42 = vrot.slane %v981_v39, 2  ;;  %v988_v12 = vrot.slane %v981_v39, 3  ;;  %v989_v14 = vrot.slane %v981_v39, 4 }
 0x52f   :  { %v990_v19 = vrot.slane %v981_v39, 5  ;;  %v991_v20 = vrot.slane %v981_v39, 6  ;;  %v1001_v21 = vadd.f32 %v981_v39, %v884_v40  ;;  %v1739_v22 = vpop.f32.mrf.mxu0  ;;  %v992_v1 = vrot.slane %v981_v39, 7  ;;  %v1030_v39 = vld [vmem:[#allocation2 + $0x2e] sm:$0x1] }
 0x530   :  { %v1002_v2 = vadd.f32 %v986_v41, %v885_v38  ;;  %v1003_v6 = vadd.f32 %v987_v42, %v886_v16  ;;  %v1004_v23 = vadd.f32 %v988_v12, %v887_v18  ;;  %v1005_v10 = vadd.f32 %v989_v14, %v888_v0  ;;  %v1031_v41 = vld [vmem:[#allocation2 + $0x36] sm:$0x1]  ;;  %v1032_v12 = vld [vmem:[#allocation2 + $0x3e] sm:$0x1] }
 0x531   :  { %1896 = vtanh.f32 %v1001_v21  ;;  %v1006_v24 = vadd.f32 %v990_v19, %v889_v8  ;;  %v1007_v45 = vadd.f32 %v991_v20, %v890_v43  ;;  %v1008_v46 = vadd.f32 %v992_v1, %v891_v44 }
 0x532   :  { %1898 = vtanh.f32 %v1002_v2 }
 0x533   :  { %1900 = vtanh.f32 %v1003_v6 }
 0x534   :  { %1902 = vtanh.f32 %v1004_v23 }
 0x535   :  { %1904 = vtanh.f32 %v1005_v10 }
 0x536   :  { %1906 = vtanh.f32 %v1006_v24 }
 0x537   :  { %1908 = vtanh.f32 %v1007_v45 }
 0x538   :  { %1910 = vtanh.f32 %v1008_v46 }
 0x53e   :  { %v1897_v25 = vpop.eup %1896 }
 0x53f   :  { %v1899_v47 = vpop.eup %1898  ;;  %1017 = vst [vmem:[#allocation2 + $0x5] sm:$0x1] %v1897_v25 }
 0x540   :  { %v1901_v48 = vpop.eup %1900  ;;  %1018 = vst [vmem:[#allocation2 + $0xd] sm:$0x1] %v1899_v47  ;;  %v1041_v49 = vrot.slane %v1899_v47, 7 }
 0x541   :  { %v1903_v50 = vpop.eup %1902  ;;  %1019 = vst [vmem:[#allocation2 + $0x15] sm:$0x1] %v1901_v48  ;;  %v1043_v51 = vrot.slane %v1901_v48, 6 }
 0x542   :  { %v1905_v52 = vpop.eup %1904  ;;  %1020 = vst [vmem:[#allocation2 + $0x1d] sm:$0x1] %v1903_v50  ;;  %v1042_v53 = vsel %vm330_vm3, %v1041_v49, %v1897_v25  ;;  %v1045_v54 = vrot.slane %v1903_v50, 5 }
 0x543   :  { %v1907_v55 = vpop.eup %1906  ;;  %1021 = vst [vmem:[#allocation2 + $0x25] sm:$0x1] %v1905_v52  ;;  %v1044_v56 = vsel %vm333_vm4, %v1043_v51, %v1042_v53  ;;  %v1047_v57 = vrot.slane %v1905_v52, 4  ;;  %v1166_v51 = vld [vmem:[#allocation2 + $0x7] sm:$0x1] }
 0x544   :  { %v1909_v58 = vpop.eup %1908  ;;  %1022 = vst [vmem:[#allocation2 + $0x2d] sm:$0x1] %v1907_v55  ;;  %v1046_v59 = vsel %vm336_vm5, %v1045_v54, %v1044_v56  ;;  %v1049_v60 = vrot.slane %v1907_v55, 3  ;;  %v1167_v53 = vld [vmem:[#allocation2 + $0xf] sm:$0x1] }
 0x545   :  { %v1911_v61 = vpop.eup %1910  ;;  %1023 = vst [vmem:[#allocation2 + $0x35] sm:$0x1] %v1909_v58  ;;  %v1048_v62 = vsel %vm339_vm6, %v1047_v57, %v1046_v59  ;;  %v1051_v63 = vrot.slane %v1909_v58, 2  ;;  %v1168_v58 = vld [vmem:[#allocation2 + $0x17] sm:$0x1] }
 0x546   :  { %1024 = vst [vmem:[#allocation2 + $0x3d] sm:$0x1] %v1911_v61  ;;  %v1050_v3 = vsel %vm342_vm7, %v1049_v60, %v1048_v62  ;;  %v1053_v4 = vrot.slane %v1911_v61, 1  ;;  %v1169_v59 = vld [vmem:[#allocation2 + $0x1f] sm:$0x1] }
 0x547   :  { %v1052_v5 = vsel %vm345_vm8, %v1051_v63, %v1050_v3  ;;  %v1170_v3 = vld [vmem:[#allocation2 + $0x27] sm:$0x1] }
 0x548   :  { %v1054_v7 = vsel %vm348_vm9, %v1053_v4, %v1052_v5 }
 0x549   :  { %1773 = vmatmul.mubr.f32.vlgmr.msra.gmra.mxu1 %v1054_v7 }
 0x609   :  { %v1122_v11 = vpop.f32.mrf.mxu1 }
 0x60a   :  { %v1127_v15 = vrot.slane %v1122_v11, 1  ;;  %v1128_v17 = vrot.slane %v1122_v11, 2  ;;  %v1129_v26 = vrot.slane %v1122_v11, 3  ;;  %v1130_v27 = vrot.slane %v1122_v11, 4 }
 0x60b   :  { %v1131_v30 = vrot.slane %v1122_v11, 5  ;;  %v1132_v31 = vrot.slane %v1122_v11, 6  ;;  %v1142_v32 = vadd.f32 %v1122_v11, %v1025_v9  ;;  %v1774_v33 = vpop.f32.mrf.mxu1  ;;  %v1133_v35 = vrot.slane %v1122_v11, 7  ;;  %v1171_v11 = vld [vmem:[#allocation2 + $0x2f] sm:$0x1] }
 0x60c   :  { %v1143_v36 = vadd.f32 %v1127_v15, %v1026_v13  ;;  %v1144_v37 = vadd.f32 %v1128_v17, %v1027_v28  ;;  %v1145_v38 = vadd.f32 %v1129_v26, %v1028_v29  ;;  %v1146_v40 = vadd.f32 %v1130_v27, %v1029_v34  ;;  %v1172_v15 = vld [vmem:[#allocation2 + $0x37] sm:$0x1]  ;;  %v1173_v26 = vld [vmem:[#allocation2 + $0x3f] sm:$0x1] }
 0x60d   :  { %1912 = vtanh.f32 %v1142_v32  ;;  %v1147_v42 = vadd.f32 %v1131_v30, %v1030_v39  ;;  %v1148_v14 = vadd.f32 %v1132_v31, %v1031_v41  ;;  %v1149_v16 = vadd.f32 %v1133_v35, %v1032_v12 }
 0x60e   :  { %1914 = vtanh.f32 %v1143_v36 }
 0x60f   :  { %1916 = vtanh.f32 %v1144_v37 }
 0x610   :  { %1918 = vtanh.f32 %v1145_v38 }
 0x611   :  { %1920 = vtanh.f32 %v1146_v40 }
 0x612   :  { %1922 = vtanh.f32 %v1147_v42 }
 0x613   :  { %1924 = vtanh.f32 %v1148_v14 }
 0x614   :  { %1926 = vtanh.f32 %v1149_v16 }
 0x61a   :  { %v1913_v18 = vpop.eup %1912 }
 0x61b   :  { %v1915_v19 = vpop.eup %1914  ;;  %1158 = vst [vmem:[#allocation2 + $0x6] sm:$0x1] %v1913_v18 }
 0x61c   :  { %v1917_v20 = vpop.eup %1916  ;;  %1159 = vst [vmem:[#allocation2 + $0xe] sm:$0x1] %v1915_v19  ;;  %v1182_v21 = vrot.slane %v1915_v19, 7 }
 0x61d   :  { %v1919_v22 = vpop.eup %1918  ;;  %1160 = vst [vmem:[#allocation2 + $0x16] sm:$0x1] %v1917_v20  ;;  %v1184_v0 = vrot.slane %v1917_v20, 6 }
 0x61e   :  { %v1921_v1 = vpop.eup %1920  ;;  %1161 = vst [vmem:[#allocation2 + $0x1e] sm:$0x1] %v1919_v22  ;;  %v1183_v2 = vsel %vm330_vm3, %v1182_v21, %v1913_v18  ;;  %v1186_v6 = vrot.slane %v1919_v22, 5 }
 0x61f   :  { %v1923_v23 = vpop.eup %1922  ;;  %1162 = vst [vmem:[#allocation2 + $0x26] sm:$0x1] %v1921_v1  ;;  %v1185_v8 = vsel %vm333_vm4, %v1184_v0, %v1183_v2  ;;  %v1188_v10 = vrot.slane %v1921_v1, 4 }
 0x620   :  { %v1925_v43 = vpop.eup %1924  ;;  %1163 = vst [vmem:[#allocation2 + $0x2e] sm:$0x1] %v1923_v23  ;;  %v1187_v24 = vsel %vm336_vm5, %v1186_v6, %v1185_v8  ;;  %v1190_v44 = vrot.slane %v1923_v23, 3 }
 0x621   :  { %v1927_v45 = vpop.eup %1926  ;;  %1164 = vst [vmem:[#allocation2 + $0x36] sm:$0x1] %v1925_v43  ;;  %v1189_v46 = vsel %vm339_vm6, %v1188_v10, %v1187_v24  ;;  %v1192_v25 = vrot.slane %v1925_v43, 2 }
 0x622   :  { %1165 = vst [vmem:[#allocation2 + $0x3e] sm:$0x1] %v1927_v45  ;;  %v1191_v47 = vsel %vm342_vm7, %v1190_v44, %v1189_v46  ;;  %v1194_v48 = vrot.slane %v1927_v45, 1 }
 0x623   :  { %v1193_v49 = vsel %vm345_vm8, %v1192_v25, %v1191_v47 }
 0x624   :  { %v1195_v50 = vsel %vm348_vm9, %v1194_v48, %v1193_v49 }
 0x625   :  { %1808 = vmatmul.mubr.f32.vlgmr.msra.gmra.mxu0 %v1195_v50 }
 0x6e5   :  { %v1263_v52 = vpop.f32.mrf.mxu0 }
 0x6e6   :  { %v1268_v54 = vrot.slane %v1263_v52, 1  ;;  %v1269_v55 = vrot.slane %v1263_v52, 2  ;;  %v1270_v56 = vrot.slane %v1263_v52, 3  ;;  %v1271_v57 = vrot.slane %v1263_v52, 4 }
 0x6e7   :  { %v1272_v60 = vrot.slane %v1263_v52, 5  ;;  %v1273_v61 = vrot.slane %v1263_v52, 6  ;;  %v1283_v62 = vadd.f32 %v1263_v52, %v1166_v51  ;;  %v1809_v63 = vpop.f32.mrf.mxu0  ;;  %v1274_v4 = vrot.slane %v1263_v52, 7 }
 0x6e8   :  { %v1284_v5 = vadd.f32 %v1268_v54, %v1167_v53  ;;  %v1285_v7 = vadd.f32 %v1269_v55, %v1168_v58  ;;  %v1286_v9 = vadd.f32 %v1270_v56, %v1169_v59  ;;  %v1287_v13 = vadd.f32 %v1271_v57, %v1170_v3 }
 0x6e9   :  { %1928 = vtanh.f32 %v1283_v62  ;;  %v1288_v17 = vadd.f32 %v1272_v60, %v1171_v11  ;;  %v1289_v27 = vadd.f32 %v1273_v61, %v1172_v15  ;;  %v1290_v28 = vadd.f32 %v1274_v4, %v1173_v26 }
 0x6ea   :  { %1930 = vtanh.f32 %v1284_v5 }
 0x6eb   :  { %1932 = vtanh.f32 %v1285_v7 }
 0x6ec   :  { %1934 = vtanh.f32 %v1286_v9 }
 0x6ed   :  { %1936 = vtanh.f32 %v1287_v13 }
 0x6ee   :  { %1938 = vtanh.f32 %v1288_v17 }
 0x6ef   :  { %1940 = vtanh.f32 %v1289_v27 }
 0x6f0   :  { %1942 = vtanh.f32 %v1290_v28 }
 0x6f6   :  { %v1929_v29 = vpop.eup %1928 }
 0x6f7   :  { %v1931_v30 = vpop.eup %1930  ;;  %1299 = vst [vmem:[#allocation2 + $0x7] sm:$0x1] %v1929_v29 }
 0x6f8   :  { %v1933_v31 = vpop.eup %1932  ;;  %1300 = vst [vmem:[#allocation2 + $0xf] sm:$0x1] %v1931_v30  ;;  %v1315_v32 = vrot.slane %v1931_v30, 7 }
 0x6f9   :  { %v1935_v33 = vpop.eup %1934  ;;  %1301 = vst [vmem:[#allocation2 + $0x17] sm:$0x1] %v1933_v31  ;;  %v1317_v34 = vrot.slane %v1933_v31, 6 }
 0x6fa   :  { %v1937_v35 = vpop.eup %1936  ;;  %1302 = vst [vmem:[#allocation2 + $0x1f] sm:$0x1] %v1935_v33  ;;  %v1316_v36 = vsel %vm330_vm3, %v1315_v32, %v1929_v29  ;;  %v1319_v37 = vrot.slane %v1935_v33, 5 }
 0x6fb   :  { %v1939_v38 = vpop.eup %1938  ;;  %1303 = vst [vmem:[#allocation2 + $0x27] sm:$0x1] %v1937_v35  ;;  %v1318_v39 = vsel %vm333_vm4, %v1317_v34, %v1316_v36  ;;  %v1321_v40 = vrot.slane %v1937_v35, 4 }
 0x6fc   :  { %v1941_v41 = vpop.eup %1940  ;;  %1304 = vst [vmem:[#allocation2 + $0x2f] sm:$0x1] %v1939_v38  ;;  %v1320_v42 = vsel %vm336_vm5, %v1319_v37, %v1318_v39  ;;  %v1323_v12 = vrot.slane %v1939_v38, 3 }
 0x6fd   :  { %v1943_v14 = vpop.eup %1942  ;;  %1305 = vst [vmem:[#allocation2 + $0x37] sm:$0x1] %v1941_v41  ;;  %v1322_v16 = vsel %vm339_vm6, %v1321_v40, %v1320_v42  ;;  %v1325_v18 = vrot.slane %v1941_v41, 2 }
 0x6fe   :  { %1306 = vst [vmem:[#allocation2 + $0x3f] sm:$0x1] %v1943_v14  ;;  %v1324_v19 = vsel %vm342_vm7, %v1323_v12, %v1322_v16  ;;  %v1327_v20 = vrot.slane %v1943_v14, 1 }
 0x6ff   :  { %1971 = shalt.err (!%p1968_p4)
}
 0x700   :  { %s2008_s24 = smov 128   ;;  %s2009_s25 = smov 8   ;;  %v1326_v21 = vsel %vm345_vm8, %v1325_v18, %v1324_v19 }
 0x701   :  { %1342 = dma.vmem_to_hbm [thread:$0]  %s1337_s20, 1024, %s2544_s4, [#allocation3], %s2008_s24, %s2008_s24, %s2009_s25   ;;  %v1328_v22 = vsel %vm348_vm9, %v1327_v20, %v1326_v21 }
 0x702   :  { %1330 = vst [vmem:[#allocation4] sm:$0xff] %v1328_v22  ;;  %s1980_s28 = scalar_lea.vmem %s1350_s22, 128  ;;  %p1985_p6 = scmp.lt.s32.totalorder %s1350_s22, %s1350_s22 }
 0x703   :  { %p1981_p5 = scmp.ne.s32.totalorder %s1350_s22, %s1980_s28  ;;  %p1986_p7 = scmp.lt.s32.totalorder %s1980_s28, %s1980_s28 }
 0x705   :  { %p1987_p8 = por %p1986_p7, %p1985_p6 }
 0x707   :  { %p1988_p9 = pnand %p1987_p8, %p1981_p5 }
 0x709   :  { %1991 = shalt.err (!%p1988_p9)
}
 0x70a   :  { %1352 = dma.vmem_to_hbm [thread:$0]  %s1350_s22, 128, %s2545_s5, [#allocation5]  }
 0x70b   :  { %2000 = dma.done.wait [#allocation3], 1024  }
 0x70c   :  { %2001 = vsyncadd [#allocation3], 4294966272 }
 0x70d   :  { %2002 = dma.done.wait [#allocation5], 128  }
 0x70e   :  { %2003 = vsyncadd [#allocation5], 4294967168 }
 0x70f   :  { %1359 = vsyncpa [#allocation3], 1 }
 0x710   :  { %1360 = vsyncpa [#allocation5], 1 }

</bundles_post_ra>
